<compile_context>
chip_gen: v6e
topology: v6e:2x2x1
jax: 0.10.0
libtpu: 0.0.40
codegen_flags: <defaults>
</compile_context>

<pallas_src>
import jax
import jax.numpy as jnp
from jax.experimental import pallas as pl
from jax.experimental.pallas import tpu as pltpu


ITEMS = 9            # input length; encoder shrinks 9 -> 7 -> 5 -> 3
ENC_LEN = 3
C1, C2, C3 = 64, 128, 256
L1, L2, L3 = 7, 5, 3  # sequence lengths after conv1 / conv2 / conv3


def _round_up(n, m):
    return (n + m - 1) // m * m


def _choose_tb(B):
    """Batch tile: big enough to amortize the ~0.35us/step overhead, small
    enough that scratch + double-buffered I/O stays ~10 MiB (fits v7x's 64 MiB
    VMEM with headroom), and >=2 grid steps when B allows (v7x megacore)."""
    TB_MAX = 1024
    if B <= 8:
        return 8
    half = _round_up((B + 1) // 2, 8)
    return min(TB_MAX, half)


def double_ae_kernel(x_ref, w1_ref, w2_ref, w3_ref, w4_ref, wd_ref, bd_ref,
                     out_ref, h1_ref, h2_ref, h3_ref):
    """One batch tile.

    x_ref  : [TB, 9]       f32 input (channel dim of size 1 squeezed)
    w1_ref : [9, 448]      banded conv1 weight (produces contiguous h1 layout)
    w2_ref : [192, 128]    K-concatenated conv2 weight (taps stacked on K)
    w3_ref : [384, 256]    K-concatenated conv3 weight
    w4_ref : [3, 768]      zero-banded conv4 taps, one 768-wide row per output t
    wd_ref : [3, items]    decoder Linear weight (in, out)
    bd_ref : [1, items]    decoder Linear bias
    out_ref: [TB, OUT_W]   lane-dense combined output: enc | dec | zero pad
    h1_ref : [TB, 448]  h2_ref: [TB, 640]  h3_ref: [TB, 768]  (VMEM scratch)
    """
    # ---- conv1 (1 -> 64, k=3, valid): ONE banded MXU matmul + ReLU ----
    h1_ref[...] = jnp.maximum(
        jnp.dot(x_ref[...], w1_ref[...], preferred_element_type=jnp.float32),
        0.0)

    # ---- conv2 (64 -> 128, k=3, valid): one [TB,192]@[192,128] per position ----
    w2 = w2_ref[...]
    for t in range(L2):
        a = h1_ref[:, t * C1:(t + 3) * C1]                    # [TB, 192]
        h2_ref[:, t * C2:(t + 1) * C2] = jnp.maximum(
            jnp.dot(a, w2, preferred_element_type=jnp.float32), 0.0)

    # ---- conv3 (128 -> 256, k=3, valid): one [TB,384]@[384,256] per position ----
    w3 = w3_ref[...]
    for t in range(L3):
        a = h2_ref[:, t * C2:(t + 3) * C2]                    # [TB, 384], 128-aligned
        h3_ref[:, t * C3:(t + 1) * C3] = jnp.maximum(
            jnp.dot(a, w3, preferred_element_type=jnp.float32), 0.0)

    # ---- conv4 (256 -> 1, k=3, pad=1) + sigmoid: wide VPU mul + XLU reduce ----
    h3 = h3_ref[...]                                          # [TB, 768]
    enc_cols = []
    for t in range(ENC_LEN):
        col = jnp.sum(h3 * w4_ref[t:t + 1, :], axis=-1, keepdims=True)
        enc_cols.append(jax.nn.sigmoid(col))                  # [TB, 1]

    # ---- decoder: Linear(3, items) + sigmoid as VPU broadcast-FMAs ----
    dec = bd_ref[...]                                         # [1, items] bias init
    for t in range(ENC_LEN):
        dec = dec + enc_cols[t] * wd_ref[t:t + 1, :]
    dec = jax.nn.sigmoid(dec)                                 # [TB, items]

    # ---- single lane-dense store: [enc | dec | zeros] -> [TB, OUT_W] ----
    enc3 = jnp.concatenate(enc_cols, axis=-1)                 # [TB, 3]
    pad_w = out_ref.shape[1] - enc3.shape[1] - dec.shape[1]
    zeros = jnp.zeros((dec.shape[0], pad_w), jnp.float32)
    out_ref[...] = jnp.concatenate([enc3, dec, zeros], axis=-1).astype(out_ref.dtype)


@jax.jit
def double_autoencoder_forward(x, w1, w2, w3, w4, wd, bd):
    """x: [B, 1, 9] f32. Conv weights in PyTorch layout [C_out, C_in, K];
    Linear weight [items, 3], bias [items]. Returns (enc [B,1,3], dec [B,1,items])."""
    B = x.shape[0]
    items = wd.shape[0]
    x2d = x.reshape(B, ITEMS).astype(jnp.float32)

    # ---- kernel-side weight prep (channels on lanes, taps K-concatenated) ----
    w1r = jnp.transpose(w1[:, 0, :], (1, 0)).astype(jnp.float32)      # [3, 64]
    w1band = jnp.zeros((ITEMS, L1 * C1), jnp.float32)                 # [9, 448]
    for t in range(L1):
        for k in range(3):
            w1band = w1band.at[t + k, t * C1:(t + 1) * C1].set(w1r[k])

    w2cat = jnp.transpose(w2, (2, 1, 0)).reshape(3 * C1, C2).astype(jnp.float32)   # [192, 128]
    w3cat = jnp.transpose(w3, (2, 1, 0)).reshape(3 * C2, C3).astype(jnp.float32)   # [384, 256]

    w4r = jnp.transpose(w4[0], (1, 0)).astype(jnp.float32)            # [3, 256]
    w4band = jnp.zeros((ENC_LEN, L3 * C3), jnp.float32)               # [3, 768]
    for t in range(ENC_LEN):
        for k in range(3):
            j = t + k - 1                                             # pad=1 tap index
            if 0 <= j < L3:
                w4band = w4band.at[t, j * C3:(j + 1) * C3].set(w4r[k])

    wdr = jnp.transpose(wd, (1, 0)).astype(jnp.float32)               # [3, items]
    bdr = bd.reshape(1, items).astype(jnp.float32)

    # ---- batch tiling ----
    TB = _choose_tb(B)
    Bpad = _round_up(B, TB)
    if Bpad != B:
        x2d = jnp.pad(x2d, ((0, Bpad - B), (0, 0)))
    grid = (Bpad // TB,)

    OUT_W = _round_up(ENC_LEN + items, 128)                           # lane-dense output

    flops_row = 2 * (ITEMS * L1 * C1 + L2 * 3 * C1 * C2 + L3 * 3 * C2 * C3
                     + ENC_LEN * L3 * C3 + ENC_LEN * items)
    weight_bytes = 4 * (ITEMS * L1 * C1 + 3 * C1 * C2 + 3 * C2 * C3
                        + ENC_LEN * L3 * C3 + 3 * items + items)
    cost = pl.CostEstimate(
        flops=flops_row * Bpad,
        transcendentals=(ENC_LEN + items) * Bpad,
        bytes_accessed=4 * Bpad * (ITEMS + OUT_W) + weight_bytes)

    out_p = pl.pallas_call(
        double_ae_kernel,
        out_shape=jax.ShapeDtypeStruct((Bpad, OUT_W), jnp.float32),
        grid=grid,
        in_specs=[
            pl.BlockSpec((TB, ITEMS), lambda i: (i, 0)),              # x tile
            pl.BlockSpec((ITEMS, L1 * C1), lambda i: (0, 0)),         # conv1 banded w
            pl.BlockSpec((3 * C1, C2), lambda i: (0, 0)),             # conv2 K-cat w
            pl.BlockSpec((3 * C2, C3), lambda i: (0, 0)),             # conv3 K-cat w
            pl.BlockSpec((ENC_LEN, L3 * C3), lambda i: (0, 0)),       # conv4 banded taps
            pl.BlockSpec((3, items), lambda i: (0, 0)),               # decoder w
            pl.BlockSpec((1, items), lambda i: (0, 0)),               # decoder b
        ],
        out_specs=pl.BlockSpec((TB, OUT_W), lambda i: (i, 0)),
        scratch_shapes=[
            pltpu.VMEM((TB, L1 * C1), jnp.float32),                   # h1 [TB, 448]
            pltpu.VMEM((TB, L2 * C2), jnp.float32),                   # h2 [TB, 640]
            pltpu.VMEM((TB, L3 * C3), jnp.float32),                   # h3 [TB, 768]
        ],
        compiler_params=pltpu.CompilerParams(
            dimension_semantics=("parallel",),                        # megacore sharding
            vmem_limit_bytes=48 << 20),                               # > v5e's 16 MiB default
        cost_estimate=cost,
    )(x2d, w1band, w2cat, w3cat, w4band, wdr, bdr)

    enc = out_p[:B, :ENC_LEN].reshape(B, 1, ENC_LEN)
    dec = out_p[:B, ENC_LEN:ENC_LEN + items].reshape(B, 1, items)
    return enc, dec


def init_params(key, items=ITEMS):
    ks = jax.random.split(key, 6)

    def u(k, shape, fan_in):
        b = 1.0 / jnp.sqrt(jnp.float32(fan_in))
        return jax.random.uniform(k, shape, jnp.float32, -b, b)

    w1 = u(ks[0], (C1, 1, 3), 1 * 3)
    w2 = u(ks[1], (C2, C1, 3), C1 * 3)
    w3 = u(ks[2], (C3, C2, 3), C2 * 3)
    w4 = u(ks[3], (1, C3, 3), C3 * 3)
    wd = u(ks[4], (items, ENC_LEN), ENC_LEN)
    bd = u(ks[5], (items,), ENC_LEN)
    return w1, w2, w3, w4, wd, bd


def _conv1d(x, w, pad):
    return jax.lax.conv_general_dilated(
        x, w, window_strides=(1,), padding=[(pad, pad)],
        dimension_numbers=("NCH", "OIH", "NCH"))


def reference_forward(x, w1, w2, w3, w4, wd, bd):
    h = jax.nn.relu(_conv1d(x, w1, 0))
    h = jax.nn.relu(_conv1d(h, w2, 0))
    h = jax.nn.relu(_conv1d(h, w3, 0))
    enc = jax.nn.sigmoid(_conv1d(h, w4, 1))                          # [B, 1, 3]
    dec = jax.nn.sigmoid(jnp.einsum("bct,ot->bco", enc, wd) + bd)    # [B, 1, items]
    return enc, dec


if __name__ == "__main__":
    key = jax.random.PRNGKey(0)
    kx, kp = jax.random.split(key)
    batch, items = 8, ITEMS
    x = jax.random.normal(kx, (batch, 1, items), jnp.float32)
    params = init_params(kp, items=items)

    enc, dec = double_autoencoder_forward(x, *params)
    jax.block_until_ready((enc, dec))

    enc_ref, dec_ref = reference_forward(x, *params)
    assert enc.shape == (batch, 1, ENC_LEN) and dec.shape == (batch, 1, items)
    assert jnp.allclose(enc, enc_ref, atol=1e-4, rtol=1e-4), "enc mismatch"
    assert jnp.allclose(dec, dec_ref, atol=1e-4, rtol=1e-4), "dec mismatch"

    print("KERNEL_OK")
</pallas_src>

<mosaic_0001>
module attributes {stable_mosaic.version = 11 : i64} {
  func.func @double_ae_kernel(%arg0: i32, %arg1: memref<8x9xf32, #tpu.memory_space<vmem>>, %arg2: memref<9x448xf32, #tpu.memory_space<vmem>>, %arg3: memref<192x128xf32, #tpu.memory_space<vmem>>, %arg4: memref<384x256xf32, #tpu.memory_space<vmem>>, %arg5: memref<3x768xf32, #tpu.memory_space<vmem>>, %arg6: memref<3x9xf32, #tpu.memory_space<vmem>>, %arg7: memref<1x9xf32, #tpu.memory_space<vmem>>, %arg8: memref<8x128xf32, #tpu.memory_space<vmem>>, %arg9: memref<8x448xf32, #tpu.memory_space<vmem>>, %arg10: memref<8x640xf32, #tpu.memory_space<vmem>>, %arg11: memref<8x768xf32, #tpu.memory_space<vmem>>) attributes {dimension_semantics = [#tpu.dimension_semantics<parallel>], iteration_bounds = array<i64: 1>, scalar_prefetch = 0 : i64, scratch_operands = 3 : i64, tpu.core_type = #tpu.core_type<tc>, window_params = [{transform_indices = @transform_0, window_bounds = array<i64: 8, 9>}, {pipeline_mode = #tpu.pipeline_mode<synchronous>, transform_indices = @transform_1, window_bounds = array<i64: 9, 448>}, {pipeline_mode = #tpu.pipeline_mode<synchronous>, transform_indices = @transform_2, window_bounds = array<i64: 192, 128>}, {pipeline_mode = #tpu.pipeline_mode<synchronous>, transform_indices = @transform_3, window_bounds = array<i64: 384, 256>}, {pipeline_mode = #tpu.pipeline_mode<synchronous>, transform_indices = @transform_4, window_bounds = array<i64: 3, 768>}, {pipeline_mode = #tpu.pipeline_mode<synchronous>, transform_indices = @transform_5, window_bounds = array<i64: 3, 9>}, {pipeline_mode = #tpu.pipeline_mode<synchronous>, transform_indices = @transform_6, window_bounds = array<i64: 1, 9>}, {transform_indices = @transform_7, window_bounds = array<i64: 8, 128>}]} {
    %c0 = arith.constant 0 : index
    %c0_0 = arith.constant 0 : index
    %0 = vector.load %arg1[%c0, %c0_0] : memref<8x9xf32, #tpu.memory_space<vmem>>, vector<8x9xf32>
    %c0_1 = arith.constant 0 : index
    %c0_2 = arith.constant 0 : index
    %1 = vector.load %arg2[%c0_1, %c0_2] : memref<9x448xf32, #tpu.memory_space<vmem>>, vector<9x448xf32>
    %cst = arith.constant dense<0.000000e+00> : vector<8x448xf32>
    %2 = tpu.matmul %0, %1, %cst {dimension_numbers = #tpu.dot_dimension_numbers<[1], [0], [0], [1], [0, 0, 1, 1], [], []>} : vector<8x9xf32>, vector<9x448xf32>, vector<8x448xf32> -> vector<8x448xf32>
    %cst_3 = arith.constant 0.000000e+00 : f32
    %3 = vector.broadcast %cst_3 : f32 to vector<8x448xf32>
    %4 = arith.maximumf %2, %3 : vector<8x448xf32>
    %c0_4 = arith.constant 0 : index
    %c0_5 = arith.constant 0 : index
    %5 = vector.load %arg9[%c0_4, %c0_5] : memref<8x448xf32, #tpu.memory_space<vmem>>, vector<8x448xf32>
    tpu.vector_store %arg9[%c0_4, %c0_5], %4 {strides = array<i32>} : memref<8x448xf32, #tpu.memory_space<vmem>>, vector<8x448xf32>,
    %c0_6 = arith.constant 0 : index
    %c0_7 = arith.constant 0 : index
    %6 = vector.load %arg3[%c0_6, %c0_7] : memref<192x128xf32, #tpu.memory_space<vmem>>, vector<192x128xf32>
    %c0_8 = arith.constant 0 : index
    %c0_9 = arith.constant 0 : index
    %7 = vector.load %arg9[%c0_8, %c0_9] : memref<8x448xf32, #tpu.memory_space<vmem>>, vector<8x192xf32>
    %cst_10 = arith.constant dense<0.000000e+00> : vector<8x128xf32>
    %8 = tpu.matmul %7, %6, %cst_10 {dimension_numbers = #tpu.dot_dimension_numbers<[1], [0], [0], [1], [0, 0, 1, 1], [], []>} : vector<8x192xf32>, vector<192x128xf32>, vector<8x128xf32> -> vector<8x128xf32>
    %cst_11 = arith.constant 0.000000e+00 : f32
    %9 = vector.broadcast %cst_11 : f32 to vector<8x128xf32>
    %10 = arith.maximumf %8, %9 : vector<8x128xf32>
    %c0_12 = arith.constant 0 : index
    %c0_13 = arith.constant 0 : index
    %11 = vector.load %arg10[%c0_12, %c0_13] : memref<8x640xf32, #tpu.memory_space<vmem>>, vector<8x128xf32>
    tpu.vector_store %arg10[%c0_12, %c0_13], %10 {strides = array<i32>} : memref<8x640xf32, #tpu.memory_space<vmem>>, vector<8x128xf32>,
    %c0_14 = arith.constant 0 : index
    %c64 = arith.constant 64 : index
    %12 = vector.load %arg9[%c0_14, %c64] : memref<8x448xf32, #tpu.memory_space<vmem>>, vector<8x192xf32>
    %cst_15 = arith.constant dense<0.000000e+00> : vector<8x128xf32>
    %13 = tpu.matmul %12, %6, %cst_15 {dimension_numbers = #tpu.dot_dimension_numbers<[1], [0], [0], [1], [0, 0, 1, 1], [], []>} : vector<8x192xf32>, vector<192x128xf32>, vector<8x128xf32> -> vector<8x128xf32>
    %cst_16 = arith.constant 0.000000e+00 : f32
    %14 = vector.broadcast %cst_16 : f32 to vector<8x128xf32>
    %15 = arith.maximumf %13, %14 : vector<8x128xf32>
    %c0_17 = arith.constant 0 : index
    %c128 = arith.constant 128 : index
    %16 = vector.load %arg10[%c0_17, %c128] : memref<8x640xf32, #tpu.memory_space<vmem>>, vector<8x128xf32>
    tpu.vector_store %arg10[%c0_17, %c128], %15 {strides = array<i32>} : memref<8x640xf32, #tpu.memory_space<vmem>>, vector<8x128xf32>,
    %c0_18 = arith.constant 0 : index
    %c128_19 = arith.constant 128 : index
    %17 = vector.load %arg9[%c0_18, %c128_19] : memref<8x448xf32, #tpu.memory_space<vmem>>, vector<8x192xf32>
    %cst_20 = arith.constant dense<0.000000e+00> : vector<8x128xf32>
    %18 = tpu.matmul %17, %6, %cst_20 {dimension_numbers = #tpu.dot_dimension_numbers<[1], [0], [0], [1], [0, 0, 1, 1], [], []>} : vector<8x192xf32>, vector<192x128xf32>, vector<8x128xf32> -> vector<8x128xf32>
    %cst_21 = arith.constant 0.000000e+00 : f32
    %19 = vector.broadcast %cst_21 : f32 to vector<8x128xf32>
    %20 = arith.maximumf %18, %19 : vector<8x128xf32>
    %c0_22 = arith.constant 0 : index
    %c256 = arith.constant 256 : index
    %21 = vector.load %arg10[%c0_22, %c256] : memref<8x640xf32, #tpu.memory_space<vmem>>, vector<8x128xf32>
    tpu.vector_store %arg10[%c0_22, %c256], %20 {strides = array<i32>} : memref<8x640xf32, #tpu.memory_space<vmem>>, vector<8x128xf32>,
    %c0_23 = arith.constant 0 : index
    %c192 = arith.constant 192 : index
    %22 = vector.load %arg9[%c0_23, %c192] : memref<8x448xf32, #tpu.memory_space<vmem>>, vector<8x192xf32>
    %cst_24 = arith.constant dense<0.000000e+00> : vector<8x128xf32>
    %23 = tpu.matmul %22, %6, %cst_24 {dimension_numbers = #tpu.dot_dimension_numbers<[1], [0], [0], [1], [0, 0, 1, 1], [], []>} : vector<8x192xf32>, vector<192x128xf32>, vector<8x128xf32> -> vector<8x128xf32>
    %cst_25 = arith.constant 0.000000e+00 : f32
    %24 = vector.broadcast %cst_25 : f32 to vector<8x128xf32>
    %25 = arith.maximumf %23, %24 : vector<8x128xf32>
    %c0_26 = arith.constant 0 : index
    %c384 = arith.constant 384 : index
    %26 = vector.load %arg10[%c0_26, %c384] : memref<8x640xf32, #tpu.memory_space<vmem>>, vector<8x128xf32>
    tpu.vector_store %arg10[%c0_26, %c384], %25 {strides = array<i32>} : memref<8x640xf32, #tpu.memory_space<vmem>>, vector<8x128xf32>,
    %c0_27 = arith.constant 0 : index
    %c256_28 = arith.constant 256 : index
    %27 = vector.load %arg9[%c0_27, %c256_28] : memref<8x448xf32, #tpu.memory_space<vmem>>, vector<8x192xf32>
    %cst_29 = arith.constant dense<0.000000e+00> : vector<8x128xf32>
    %28 = tpu.matmul %27, %6, %cst_29 {dimension_numbers = #tpu.dot_dimension_numbers<[1], [0], [0], [1], [0, 0, 1, 1], [], []>} : vector<8x192xf32>, vector<192x128xf32>, vector<8x128xf32> -> vector<8x128xf32>
    %cst_30 = arith.constant 0.000000e+00 : f32
    %29 = vector.broadcast %cst_30 : f32 to vector<8x128xf32>
    %30 = arith.maximumf %28, %29 : vector<8x128xf32>
    %c0_31 = arith.constant 0 : index
    %c512 = arith.constant 512 : index
    %31 = vector.load %arg10[%c0_31, %c512] : memref<8x640xf32, #tpu.memory_space<vmem>>, vector<8x128xf32>
    tpu.vector_store %arg10[%c0_31, %c512], %30 {strides = array<i32>} : memref<8x640xf32, #tpu.memory_space<vmem>>, vector<8x128xf32>,
    %c0_32 = arith.constant 0 : index
    %c0_33 = arith.constant 0 : index
    %32 = vector.load %arg4[%c0_32, %c0_33] : memref<384x256xf32, #tpu.memory_space<vmem>>, vector<384x256xf32>
    %c0_34 = arith.constant 0 : index
    %c0_35 = arith.constant 0 : index
    %33 = vector.load %arg10[%c0_34, %c0_35] : memref<8x640xf32, #tpu.memory_space<vmem>>, vector<8x384xf32>
    %cst_36 = arith.constant dense<0.000000e+00> : vector<8x256xf32>
    %34 = tpu.matmul %33, %32, %cst_36 {dimension_numbers = #tpu.dot_dimension_numbers<[1], [0], [0], [1], [0, 0, 1, 1], [], []>} : vector<8x384xf32>, vector<384x256xf32>, vector<8x256xf32> -> vector<8x256xf32>
    %cst_37 = arith.constant 0.000000e+00 : f32
    %35 = vector.broadcast %cst_37 : f32 to vector<8x256xf32>
    %36 = arith.maximumf %34, %35 : vector<8x256xf32>
    %c0_38 = arith.constant 0 : index
    %c0_39 = arith.constant 0 : index
    %37 = vector.load %arg11[%c0_38, %c0_39] : memref<8x768xf32, #tpu.memory_space<vmem>>, vector<8x256xf32>
    tpu.vector_store %arg11[%c0_38, %c0_39], %36 {strides = array<i32>} : memref<8x768xf32, #tpu.memory_space<vmem>>, vector<8x256xf32>,
    %c0_40 = arith.constant 0 : index
    %c128_41 = arith.constant 128 : index
    %38 = vector.load %arg10[%c0_40, %c128_41] : memref<8x640xf32, #tpu.memory_space<vmem>>, vector<8x384xf32>
    %cst_42 = arith.constant dense<0.000000e+00> : vector<8x256xf32>
    %39 = tpu.matmul %38, %32, %cst_42 {dimension_numbers = #tpu.dot_dimension_numbers<[1], [0], [0], [1], [0, 0, 1, 1], [], []>} : vector<8x384xf32>, vector<384x256xf32>, vector<8x256xf32> -> vector<8x256xf32>
    %cst_43 = arith.constant 0.000000e+00 : f32
    %40 = vector.broadcast %cst_43 : f32 to vector<8x256xf32>
    %41 = arith.maximumf %39, %40 : vector<8x256xf32>
    %c0_44 = arith.constant 0 : index
    %c256_45 = arith.constant 256 : index
    %42 = vector.load %arg11[%c0_44, %c256_45] : memref<8x768xf32, #tpu.memory_space<vmem>>, vector<8x256xf32>
    tpu.vector_store %arg11[%c0_44, %c256_45], %41 {strides = array<i32>} : memref<8x768xf32, #tpu.memory_space<vmem>>, vector<8x256xf32>,
    %c0_46 = arith.constant 0 : index
    %c256_47 = arith.constant 256 : index
    %43 = vector.load %arg10[%c0_46, %c256_47] : memref<8x640xf32, #tpu.memory_space<vmem>>, vector<8x384xf32>
    %cst_48 = arith.constant dense<0.000000e+00> : vector<8x256xf32>
    %44 = tpu.matmul %43, %32, %cst_48 {dimension_numbers = #tpu.dot_dimension_numbers<[1], [0], [0], [1], [0, 0, 1, 1], [], []>} : vector<8x384xf32>, vector<384x256xf32>, vector<8x256xf32> -> vector<8x256xf32>
    %cst_49 = arith.constant 0.000000e+00 : f32
    %45 = vector.broadcast %cst_49 : f32 to vector<8x256xf32>
    %46 = arith.maximumf %44, %45 : vector<8x256xf32>
    %c0_50 = arith.constant 0 : index
    %c512_51 = arith.constant 512 : index
    %47 = vector.load %arg11[%c0_50, %c512_51] : memref<8x768xf32, #tpu.memory_space<vmem>>, vector<8x256xf32>
    tpu.vector_store %arg11[%c0_50, %c512_51], %46 {strides = array<i32>} : memref<8x768xf32, #tpu.memory_space<vmem>>, vector<8x256xf32>,
    %c0_52 = arith.constant 0 : index
    %c0_53 = arith.constant 0 : index
    %48 = vector.load %arg11[%c0_52, %c0_53] : memref<8x768xf32, #tpu.memory_space<vmem>>, vector<8x768xf32>
    %c0_54 = arith.constant 0 : index
    %c0_55 = arith.constant 0 : index
    %49 = vector.load %arg5[%c0_54, %c0_55] : memref<3x768xf32, #tpu.memory_space<vmem>>, vector<1x768xf32>
    %50 = vector.broadcast %49 : vector<1x768xf32> to vector<8x768xf32>
    %51 = arith.mulf %48, %50 : vector<8x768xf32>
    %cst_56 = arith.constant dense<0.000000e+00> : vector<8xf32>
    %52 = vector.multi_reduction <add>, %51, %cst_56 [1] : vector<8x768xf32> to vector<8xf32>
    %53 = vector.shape_cast %52 : vector<8xf32> to vector<8x1xf32>
    %54 = arith.negf %53 : vector<8x1xf32>
    %55 = math.exp %54 : vector<8x1xf32>
    %cst_57 = arith.constant 1.000000e+00 : f32
    %56 = vector.broadcast %cst_57 : f32 to vector<8x1xf32>
    %57 = arith.addf %56, %55 : vector<8x1xf32>
    %58 = arith.divf %56, %57 : vector<8x1xf32>
    %c1 = arith.constant 1 : index
    %c0_58 = arith.constant 0 : index
    %59 = vector.load %arg5[%c1, %c0_58] : memref<3x768xf32, #tpu.memory_space<vmem>>, vector<1x768xf32>
    %60 = vector.broadcast %59 : vector<1x768xf32> to vector<8x768xf32>
    %61 = arith.mulf %48, %60 : vector<8x768xf32>
    %cst_59 = arith.constant dense<0.000000e+00> : vector<8xf32>
    %62 = vector.multi_reduction <add>, %61, %cst_59 [1] : vector<8x768xf32> to vector<8xf32>
    %63 = vector.shape_cast %62 : vector<8xf32> to vector<8x1xf32>
    %64 = arith.negf %63 : vector<8x1xf32>
    %65 = math.exp %64 : vector<8x1xf32>
    %cst_60 = arith.constant 1.000000e+00 : f32
    %66 = vector.broadcast %cst_60 : f32 to vector<8x1xf32>
    %67 = arith.addf %66, %65 : vector<8x1xf32>
    %68 = arith.divf %66, %67 : vector<8x1xf32>
    %c2 = arith.constant 2 : index
    %c0_61 = arith.constant 0 : index
    %69 = vector.load %arg5[%c2, %c0_61] : memref<3x768xf32, #tpu.memory_space<vmem>>, vector<1x768xf32>
    %70 = vector.broadcast %69 : vector<1x768xf32> to vector<8x768xf32>
    %71 = arith.mulf %48, %70 : vector<8x768xf32>
    %cst_62 = arith.constant dense<0.000000e+00> : vector<8xf32>
    %72 = vector.multi_reduction <add>, %71, %cst_62 [1] : vector<8x768xf32> to vector<8xf32>
    %73 = vector.shape_cast %72 : vector<8xf32> to vector<8x1xf32>
    %74 = arith.negf %73 : vector<8x1xf32>
    %75 = math.exp %74 : vector<8x1xf32>
    %cst_63 = arith.constant 1.000000e+00 : f32
    %76 = vector.broadcast %cst_63 : f32 to vector<8x1xf32>
    %77 = arith.addf %76, %75 : vector<8x1xf32>
    %78 = arith.divf %76, %77 : vector<8x1xf32>
    %c0_64 = arith.constant 0 : index
    %c0_65 = arith.constant 0 : index
    %79 = vector.load %arg7[%c0_64, %c0_65] : memref<1x9xf32, #tpu.memory_space<vmem>>, vector<1x9xf32>
    %c0_66 = arith.constant 0 : index
    %c0_67 = arith.constant 0 : index
    %80 = vector.load %arg6[%c0_66, %c0_67] : memref<3x9xf32, #tpu.memory_space<vmem>>, vector<1x9xf32>
    %81 = vector.broadcast %58 : vector<8x1xf32> to vector<8x9xf32>
    %82 = vector.broadcast %80 : vector<1x9xf32> to vector<8x9xf32>
    %83 = arith.mulf %81, %82 : vector<8x9xf32>
    %84 = vector.broadcast %79 : vector<1x9xf32> to vector<8x9xf32>
    %85 = arith.addf %84, %83 : vector<8x9xf32>
    %c1_68 = arith.constant 1 : index
    %c0_69 = arith.constant 0 : index
    %86 = vector.load %arg6[%c1_68, %c0_69] : memref<3x9xf32, #tpu.memory_space<vmem>>, vector<1x9xf32>
    %87 = vector.broadcast %68 : vector<8x1xf32> to vector<8x9xf32>
    %88 = vector.broadcast %86 : vector<1x9xf32> to vector<8x9xf32>
    %89 = arith.mulf %87, %88 : vector<8x9xf32>
    %90 = arith.addf %85, %89 : vector<8x9xf32>
    %c2_70 = arith.constant 2 : index
    %c0_71 = arith.constant 0 : index
    %91 = vector.load %arg6[%c2_70, %c0_71] : memref<3x9xf32, #tpu.memory_space<vmem>>, vector<1x9xf32>
    %92 = vector.broadcast %78 : vector<8x1xf32> to vector<8x9xf32>
    %93 = vector.broadcast %91 : vector<1x9xf32> to vector<8x9xf32>
    %94 = arith.mulf %92, %93 : vector<8x9xf32>
    %95 = arith.addf %90, %94 : vector<8x9xf32>
    %96 = arith.negf %95 : vector<8x9xf32>
    %97 = math.exp %96 : vector<8x9xf32>
    %cst_72 = arith.constant 1.000000e+00 : f32
    %98 = vector.broadcast %cst_72 : f32 to vector<8x9xf32>
    %99 = arith.addf %98, %97 : vector<8x9xf32>
    %100 = arith.divf %98, %99 : vector<8x9xf32>
    %101 = tpu.concatenate %58, %68, %78 in 1 : vector<8x1xf32>, vector<8x1xf32>, vector<8x1xf32> -> vector<8x3xf32>
    %cst_73 = arith.constant 0.000000e+00 : f32
    %102 = vector.broadcast %cst_73 : f32 to vector<8x116xf32>
    %103 = tpu.concatenate %101, %100, %102 in 1 : vector<8x3xf32>, vector<8x9xf32>, vector<8x116xf32> -> vector<8x128xf32>
    %c0_74 = arith.constant 0 : index
    %c0_75 = arith.constant 0 : index
    %104 = vector.load %arg8[%c0_74, %c0_75] : memref<8x128xf32, #tpu.memory_space<vmem>>, vector<8x128xf32>
    tpu.vector_store %arg8[%c0_74, %c0_75], %103 {strides = array<i32>} : memref<8x128xf32, #tpu.memory_space<vmem>>, vector<8x128xf32>,
    return
  }
  func.func @transform_0(%arg0: i32) -> (i32, i32) {
    %c0_i32 = arith.constant 0 : i32
    %c0_i32_0 = arith.constant 0 : i32
    return %arg0, %c0_i32 : i32, i32
  }
  func.func @transform_1(%arg0: i32) -> (i32, i32) {
    %c0_i32 = arith.constant 0 : i32
    %c0_i32_0 = arith.constant 0 : i32
    %c0_i32_1 = arith.constant 0 : i32
    return %c0_i32, %c0_i32_0 : i32, i32
  }
  func.func @transform_2(%arg0: i32) -> (i32, i32) {
    %c0_i32 = arith.constant 0 : i32
    %c0_i32_0 = arith.constant 0 : i32
    %c0_i32_1 = arith.constant 0 : i32
    return %c0_i32, %c0_i32_0 : i32, i32
  }
  func.func @transform_3(%arg0: i32) -> (i32, i32) {
    %c0_i32 = arith.constant 0 : i32
    %c0_i32_0 = arith.constant 0 : i32
    %c0_i32_1 = arith.constant 0 : i32
    return %c0_i32, %c0_i32_0 : i32, i32
  }
  func.func @transform_4(%arg0: i32) -> (i32, i32) {
    %c0_i32 = arith.constant 0 : i32
    %c0_i32_0 = arith.constant 0 : i32
    %c0_i32_1 = arith.constant 0 : i32
    return %c0_i32, %c0_i32_0 : i32, i32
  }
  func.func @transform_5(%arg0: i32) -> (i32, i32) {
    %c0_i32 = arith.constant 0 : i32
    %c0_i32_0 = arith.constant 0 : i32
    %c0_i32_1 = arith.constant 0 : i32
    return %c0_i32, %c0_i32_0 : i32, i32
  }
  func.func @transform_6(%arg0: i32) -> (i32, i32) {
    %c0_i32 = arith.constant 0 : i32
    %c0_i32_0 = arith.constant 0 : i32
    %c0_i32_1 = arith.constant 0 : i32
    return %c0_i32, %c0_i32_0 : i32, i32
  }
  func.func @transform_7(%arg0: i32) -> (i32, i32) {
    %c0_i32 = arith.constant 0 : i32
    %c0_i32_0 = arith.constant 0 : i32
    return %arg0, %c0_i32 : i32, i32
  }
}

</mosaic_0001>

<bundles_post_ra>
// kernel: double_autoencoder_forward.1
= control target key start
LH: loop header
LB: loop body
LE: loop exit
PB: predicated region body
PF: predicated region fallthrough
CT: control target
= control target key end

     0   :  { %vm39_vm0 = vcmask 1040384   ;;  %v2724_v3 = vmov 0.0   ;;  %vm35_vm1 = vcmask 72704   ;;  %vm201_vm2 = vcmask 523264   ;;  %s1422_s17 = smov 64   ;;  %s2716_s1 = inlined_call_operand.vmem [shape: f32[9,448], index: 1, kind: input, shape index: {}]   ;;  %s2717_s0 = inlined_call_operand.vmem [shape: f32[8,9], index: 0, kind: input, shape index: {}]   ;;  %s2718_s2 = inlined_call_operand.vmem [shape: f32[192,128], index: 2, kind: input, shape index: {}]   ;;  %s2719_s3 = inlined_call_operand.vmem [shape: f32[384,256], index: 3, kind: input, shape index: {}]   ;;  %s2720_s4 = inlined_call_operand.vmem [shape: f32[3,768], index: 4, kind: input, shape index: {}]   ;;  %s2721_s5 = inlined_call_operand.vmem [shape: f32[3,9], index: 5, kind: input, shape index: {}]   ;;  %s2722_s6 = inlined_call_operand.vmem [shape: f32[1,9], index: 6, kind: input, shape index: {}]   ;;  %s2723_s7 = inlined_call_operand.vmem [shape: f32[8,128], index: 7, kind: output, shape index: {}]  }
   0x1   :  { %v32_v0 = vld [vmem:[%s2716_s1 + $0x28] sm:$0x1]  ;;  %v31_v1 = vld [vmem:[%s2716_s1 + $0x20] sm:$0x1]  ;;  %116 = vmatprep.mubr.f32.mxu1 %v2724_v3  ;;  %232 = vmatprep.subr.mxu0 %v2724_v3  ;;  %v34_v6 = vld [vmem:[%s2716_s1 + $0x38] sm:$0x1] }
   0x2   :  { %v28_v2 = vld [vmem:[%s2716_s1 + $0x8] sm:$0xff]  ;;  %1381 = vmatprep.subr.msk.mxu1 %vm39_vm0, %v32_v0  ;;  %v27_v4 = vld [vmem:[%s2716_s1] sm:$0xff]  ;;  %v33_v7 = vld [vmem:[%s2716_s1 + $0x30] sm:$0x1]  ;;  %vm1364_vm3 = vcmask 7168   ;;  %vm1366_vm4 = vcmask 15360  }
   0x3   :  { %1382 = vmatpush1.msk.msra.mxu1 %vm39_vm0, %v31_v1  ;;  %v26_v5 = vld [vmem:[%s2717_s0] sm:$0xff]  ;;  %v1492_v8 = vld [vmem:[%s2718_s2 + $0x78] sm:$0xff]  ;;  %v29_v10 = vld [vmem:[%s2716_s1 + $0x10] sm:$0xff]  ;;  %vm1372_vm5 = vcmask 23552   ;;  %vm1374_vm6 = vcmask 97280  }
   0x4   :  { %82 = vmatprep.subr.mxu1 %v28_v2  ;;  %v30_v9 = vld [vmem:[%s2716_s1 + $0x18] sm:$0xff]  ;;  %233 = vmatpush1.msra.mxu0 %v1492_v8  ;;  %v1506_v11 = vld [vmem:[%s2718_s2 + $0x70] sm:$0xff]  ;;  %v1514_v12 = vld [vmem:[%s2718_s2 + $0x68] sm:$0xff] }
   0x5   :  { %83 = vmatpush1.msra.mxu1 %v27_v4  ;;  %234 = vmatprep.subr.mxu0 %v2724_v3  ;;  %v1522_v13 = vld [vmem:[%s2718_s2 + $0x60] sm:$0xff]  ;;  %v1530_v14 = vld [vmem:[%s2718_s2 + $0x58] sm:$0xff]  ;;  %v1539_v15 = vld [vmem:[%s2718_s2 + $0x50] sm:$0xff] }
   0x6   :  { %1383 = vmatmul.mubr.msk.f32.vlgmr.msra.gmra.mxu1 %vm35_vm1, %v26_v5  ;;  %1384 = vmatprep.subr.msk.mxu1 %vm39_vm0, %v34_v6  ;;  %v1548_v16 = vld [vmem:[%s2718_s2 + $0x48] sm:$0xff]  ;;  %v1557_v17 = vld [vmem:[%s2718_s2 + $0x40] sm:$0xff]  ;;  %v1566_v18 = vld [vmem:[%s2718_s2 + $0x38] sm:$0xff] }
   0x7   :  { %1385 = vmatpush1.msk.msra.mxu1 %vm39_vm0, %v33_v7  ;;  %187 = vmatprep.mubr.f32.mxu1 %v2724_v3  ;;  %v1575_v19 = vld [vmem:[%s2718_s2 + $0x30] sm:$0xff]  ;;  %v1584_v20 = vld [vmem:[%s2718_s2 + $0x28] sm:$0xff]  ;;  %v1593_v21 = vld [vmem:[%s2718_s2 + $0x20] sm:$0xff] }
   0x8   :  { %153 = vmatprep.subr.mxu1 %v30_v9  ;;  %235 = vmatpush1.msra.mxu0 %v1506_v11  ;;  %v1602_v22 = vld [vmem:[%s2718_s2 + $0x18] sm:$0xff]  ;;  %v1611_v23 = vld [vmem:[%s2718_s2 + $0x10] sm:$0xff]  ;;  %v1620_v24 = vld [vmem:[%s2718_s2 + $0x8] sm:$0xff] }
   0x9   :  { %154 = vmatpush1.msra.mxu1 %v29_v10  ;;  %236 = vmatprep.subr.mxu0 %v2724_v3  ;;  %v1629_v25 = vld [vmem:[%s2718_s2] sm:$0xff]  ;;  %v1638_v26 = vld [vmem:[%s2718_s2 + $0xb8] sm:$0xff]  ;;  %v1657_v27 = vld [vmem:[%s2718_s2 + $0xb0] sm:$0xff] }
   0xa   :  { %1386 = vmatmul.mubr.msk.f32.vlgmr.msra.gmra.mxu1 %vm35_vm1, %v26_v5  ;;  %237 = vmatpush1.msra.mxu0 %v1514_v12  ;;  %v1665_v28 = vld [vmem:[%s2718_s2 + $0xa8] sm:$0xff]  ;;  %v1674_v29 = vld [vmem:[%s2718_s2 + $0xa0] sm:$0xff]  ;;  %v1683_v30 = vld [vmem:[%s2718_s2 + $0x98] sm:$0xff] }
   0xb   :  { %316 = vmatprep.subr.mxu1 %v2724_v3  ;;  %238 = vmatprep.subr.mxu0 %v2724_v3  ;;  %v1692_v31 = vld [vmem:[%s2718_s2 + $0x90] sm:$0xff]  ;;  %v1701_v32 = vld [vmem:[%s2718_s2 + $0x88] sm:$0xff]  ;;  %v1710_v33 = vld [vmem:[%s2718_s2 + $0x80] sm:$0xff] }
   0xc   :  { %317 = vmatpush1.msra.mxu1 %v1492_v8  ;;  %239 = vmatpush1.msra.mxu0 %v1522_v13  ;;  %v1821_v43 = vld [vmem:[%s2719_s3 + $0x2f8] sm:$0xff]  ;;  %v1827_v44 = vld [vmem:[%s2719_s3 + $0x2f0] sm:$0xff]  ;;  %v1833_v45 = vld [vmem:[%s2719_s3 + $0x2e8] sm:$0xff] }
   0xd   :  { %318 = vmatprep.subr.mxu1 %v2724_v3  ;;  %240 = vmatprep.subr.mxu0 %v2724_v3  ;;  %2817 = vst [vmem:[#allocation5_spill] sm:$0xff] %v1821_v43  ;;  %v1840_v46 = vld [vmem:[%s2719_s3 + $0x2e0] sm:$0xff]  ;;  %v1846_v47 = vld [vmem:[%s2719_s3 + $0x2d8] sm:$0xff]  ;;  %v1853_v48 = vld [vmem:[%s2719_s3 + $0x2d0] sm:$0xff] }
   0xe   :  { %319 = vmatpush1.msra.mxu1 %v1506_v11  ;;  %241 = vmatpush1.msra.mxu0 %v1530_v14  ;;  %v1859_v49 = vld [vmem:[%s2719_s3 + $0x2c8] sm:$0xff]  ;;  %v1865_v50 = vld [vmem:[%s2719_s3 + $0x2c0] sm:$0xff]  ;;  %v1871_v51 = vld [vmem:[%s2719_s3 + $0x2b8] sm:$0xff] }
   0xf   :  { %320 = vmatprep.subr.mxu1 %v2724_v3  ;;  %242 = vmatprep.subr.mxu0 %v2724_v3  ;;  %v1877_v52 = vld [vmem:[%s2719_s3 + $0x2b0] sm:$0xff]  ;;  %v1883_v53 = vld [vmem:[%s2719_s3 + $0x2a8] sm:$0xff]  ;;  %v1889_v54 = vld [vmem:[%s2719_s3 + $0x2a0] sm:$0xff] }
  0x10   :  { %321 = vmatpush1.msra.mxu1 %v1514_v12  ;;  %243 = vmatpush1.msra.mxu0 %v1539_v15  ;;  %v1895_v55 = vld [vmem:[%s2719_s3 + $0x298] sm:$0xff]  ;;  %v1901_v56 = vld [vmem:[%s2719_s3 + $0x290] sm:$0xff]  ;;  %v1907_v57 = vld [vmem:[%s2719_s3 + $0x288] sm:$0xff] }
  0x11   :  { %322 = vmatprep.subr.mxu1 %v2724_v3  ;;  %244 = vmatprep.subr.mxu0 %v2724_v3  ;;  %v1913_v58 = vld [vmem:[%s2719_s3 + $0x280] sm:$0xff]  ;;  %v1919_v59 = vld [vmem:[%s2719_s3 + $0x278] sm:$0xff]  ;;  %v1925_v60 = vld [vmem:[%s2719_s3 + $0x270] sm:$0xff] }
  0x12   :  { %323 = vmatpush1.msra.mxu1 %v1522_v13  ;;  %245 = vmatpush1.msra.mxu0 %v1548_v16  ;;  %2818 = vst [vmem:[#allocation6_spill] sm:$0xff] %v1919_v59  ;;  %2819 = vst [vmem:[#allocation7_spill] sm:$0xff] %v1925_v60  ;;  %v1931_v62 = vld [vmem:[%s2719_s3 + $0x268] sm:$0xff]  ;;  %v1937_v63 = vld [vmem:[%s2719_s3 + $0x260] sm:$0xff] }
  0x13   :  { %324 = vmatprep.subr.mxu1 %v2724_v3  ;;  %246 = vmatprep.subr.mxu0 %v2724_v3  ;;  %2820 = vst [vmem:[#allocation8_spill] sm:$0xff] %v1931_v62  ;;  %2821 = vst [vmem:[#allocation9_spill] sm:$0xff] %v1937_v63  ;;  %v1945_v1 = vld [vmem:[%s2719_s3 + $0x258] sm:$0xff]  ;;  %v1951_v2 = vld [vmem:[%s2719_s3 + $0x250] sm:$0xff] }
  0x14   :  { %325 = vmatpush1.msra.mxu1 %v1530_v14  ;;  %247 = vmatpush1.msra.mxu0 %v1557_v17  ;;  %2822 = vst [vmem:[#allocation10_spill] sm:$0xff] %v1945_v1  ;;  %2823 = vst [vmem:[#allocation11_spill] sm:$0xff] %v1951_v2  ;;  %v1960_v6 = vld [vmem:[%s2719_s3 + $0x248] sm:$0xff]  ;;  %v1968_v9 = vld [vmem:[%s2719_s3 + $0x240] sm:$0xff] }
  0x15   :  { %326 = vmatprep.subr.mxu1 %v2724_v3  ;;  %248 = vmatprep.subr.mxu0 %v2724_v3  ;;  %2824 = vst [vmem:[#allocation12_spill] sm:$0xff] %v1960_v6  ;;  %2825 = vst [vmem:[#allocation13_spill] sm:$0xff] %v1968_v9  ;;  %v1976_v10 = vld [vmem:[%s2719_s3 + $0x238] sm:$0xff] }
  0x16   :  { %327 = vmatpush1.msra.mxu1 %v1539_v15  ;;  %249 = vmatpush1.msra.mxu0 %v1566_v18  ;;  %2826 = vst [vmem:[#allocation14_spill] sm:$0xff] %v1976_v10 }
  0x17   :  { %328 = vmatprep.subr.mxu1 %v2724_v3  ;;  %250 = vmatprep.subr.mxu0 %v2724_v3 }
  0x18   :  { %329 = vmatpush1.msra.mxu1 %v1548_v16  ;;  %251 = vmatpush1.msra.mxu0 %v1575_v19 }
  0x19   :  { %330 = vmatprep.subr.mxu1 %v2724_v3  ;;  %252 = vmatprep.subr.mxu0 %v2724_v3 }
  0x1a   :  { %331 = vmatpush1.msra.mxu1 %v1557_v17  ;;  %253 = vmatpush1.msra.mxu0 %v1584_v20 }
  0x1b   :  { %332 = vmatprep.subr.mxu1 %v2724_v3  ;;  %254 = vmatprep.subr.mxu0 %v2724_v3 }
  0x1c   :  { %333 = vmatpush1.msra.mxu1 %v1566_v18  ;;  %255 = vmatpush1.msra.mxu0 %v1593_v21 }
  0x1d   :  { %334 = vmatprep.subr.mxu1 %v2724_v3  ;;  %256 = vmatprep.subr.mxu0 %v2724_v3 }
  0x1e   :  { %335 = vmatpush1.msra.mxu1 %v1575_v19  ;;  %257 = vmatpush1.msra.mxu0 %v1602_v22 }
  0x1f   :  { %336 = vmatprep.subr.mxu1 %v2724_v3  ;;  %258 = vmatprep.subr.mxu0 %v2724_v3 }
  0x20   :  { %337 = vmatpush1.msra.mxu1 %v1584_v20  ;;  %259 = vmatpush1.msra.mxu0 %v1611_v23 }
  0x21   :  { %338 = vmatprep.subr.mxu1 %v2724_v3  ;;  %260 = vmatprep.subr.mxu0 %v2724_v3 }
  0x22   :  { %339 = vmatpush1.msra.mxu1 %v1593_v21  ;;  %261 = vmatpush1.msra.mxu0 %v1620_v24 }
  0x23   :  { %340 = vmatprep.subr.mxu1 %v2724_v3  ;;  %262 = vmatprep.subr.mxu0 %v2724_v3 }
  0x24   :  { %341 = vmatpush1.msra.mxu1 %v1602_v22  ;;  %263 = vmatpush1.msra.mxu0 %v1629_v25 }
  0x25   :  { %342 = vmatprep.subr.mxu1 %v2724_v3  ;;  %280 = vmatprep.subr.mxu0 %v2724_v3 }
  0x26   :  { %343 = vmatpush1.msra.mxu1 %v1611_v23  ;;  %281 = vmatpush2.msra.mxu0 %v1638_v26 }
  0x27   :  { %344 = vmatprep.subr.mxu1 %v2724_v3  ;;  %282 = vmatprep.subr.mxu0 %v2724_v3 }
  0x28   :  { %345 = vmatpush1.msra.mxu1 %v1620_v24  ;;  %283 = vmatpush2.msra.mxu0 %v1657_v27 }
  0x29   :  { %346 = vmatprep.subr.mxu1 %v2724_v3  ;;  %284 = vmatprep.subr.mxu0 %v2724_v3 }
  0x2a   :  { %347 = vmatpush1.msra.mxu1 %v1629_v25  ;;  %285 = vmatpush2.msra.mxu0 %v1665_v28 }
  0x2b   :  { %364 = vmatprep.subr.mxu1 %v2724_v3  ;;  %286 = vmatprep.subr.mxu0 %v2724_v3 }
  0x2c   :  { %365 = vmatpush2.msra.mxu1 %v1638_v26  ;;  %287 = vmatpush2.msra.mxu0 %v1674_v29 }
  0x2d   :  { %366 = vmatprep.subr.mxu1 %v2724_v3  ;;  %288 = vmatprep.subr.mxu0 %v2724_v3 }
  0x2e   :  { %367 = vmatpush2.msra.mxu1 %v1657_v27  ;;  %289 = vmatpush2.msra.mxu0 %v1683_v30 }
  0x2f   :  { %368 = vmatprep.subr.mxu1 %v2724_v3  ;;  %290 = vmatprep.subr.mxu0 %v2724_v3 }
  0x30   :  { %369 = vmatpush2.msra.mxu1 %v1665_v28  ;;  %291 = vmatpush2.msra.mxu0 %v1692_v31 }
  0x31   :  { %370 = vmatprep.subr.mxu1 %v2724_v3  ;;  %292 = vmatprep.subr.mxu0 %v2724_v3 }
  0x32   :  { %371 = vmatpush2.msra.mxu1 %v1674_v29  ;;  %293 = vmatpush2.msra.mxu0 %v1701_v32 }
  0x33   :  { %372 = vmatprep.subr.mxu1 %v2724_v3  ;;  %294 = vmatprep.subr.mxu0 %v2724_v3 }
  0x34   :  { %373 = vmatpush2.msra.mxu1 %v1683_v30  ;;  %295 = vmatpush2.msra.mxu0 %v1710_v33 }
  0x35   :  { %374 = vmatprep.subr.mxu1 %v2724_v3  ;;  %393 = vmatprep.subr.mxu0 %v2724_v3 }
  0x36   :  { %375 = vmatpush2.msra.mxu1 %v1692_v31 }
  0x37   :  { %376 = vmatprep.subr.mxu1 %v2724_v3 }
  0x38   :  { %377 = vmatpush2.msra.mxu1 %v1701_v32 }
  0x39   :  { %378 = vmatprep.subr.mxu1 %v2724_v3 }
  0x3a   :  { %379 = vmatpush2.msra.mxu1 %v1710_v33 }
  0x3b   :  { %477 = vmatprep.subr.mxu1 %v2724_v3 }
  0xc6   :  { %v118_v34 = vpop.f32.mrf.mxu1 }
  0xc7   :  { %v194_v35 = vmax.f32 %v118_v34, 0.0  ;;  %v1983_v34 = vld [vmem:[%s2719_s3 + $0x230] sm:$0xff] }
  0xc8   :  { %v120_v36 = vpop.f32.mrf.mxu1  ;;  %2827 = vst [vmem:[#allocation15_spill] sm:$0xff] %v1983_v34 }
  0xc9   :  { %v195_v37 = vmax.f32 %v120_v36, 0.0  ;;  %308 = vrot.lane.b32.xlu0 %v194_v35, %s1422_s17  ;;  %v2011_v36 = vld [vmem:[%s2719_s3 + $0x210] sm:$0xff] }
  0xca   :  { %v189_v38 = vpop.f32.mrf.mxu1  ;;  %2831 = vst [vmem:[#allocation19_spill] sm:$0xff] %v2011_v36 }
  0xcb   :  { %v1717_v39 = vmax.f32 %v189_v38, 0.0  ;;  %469 = vrot.lane.b32.xlu1 %v195_v37, %s1422_s17  ;;  %1387 = vmatprep.mubr.msk.f32.mxu0 %vm201_vm2, %v195_v37  ;;  %v2194_v38 = vld [vmem:[%s2719_s3 + $0x58] sm:$0xff] }
  0xcc   :  { %297 = vmatmul.mubr.f32.vlgmr.msra.gmra.mxu0 %v194_v35  ;;  %v191_v40 = vpop.f32.mrf.mxu1  ;;  %v1997_v35 = vld [vmem:[%s2719_s3 + $0x220] sm:$0xff] }
  0xcd   :  { %394 = vmatpush1.msra.mxu0 %v1492_v8  ;;  %310 = vrot.lane.b32.xlu0 %v195_v37, %s1422_s17  ;;  %v197_v41 = vmax.f32 %v191_v40, 0.0  ;;  %2829 = vst [vmem:[#allocation17_spill] sm:$0xff] %v1997_v35  ;;  %v2206_v40 = vld [vmem:[%s2719_s3 + $0x48] sm:$0xff] }
  0xce   :  { %395 = vmatprep.subr.mxu0 %v2724_v3  ;;  %1389 = vmatprep.mubr.msk.f32.mxu0 %vm201_vm2, %v1717_v39 }
  0xcf   :  { %396 = vmatpush1.msra.mxu0 %v1506_v11  ;;  %471 = vrot.lane.b32.xlu1 %v1717_v39, %s1422_s17  ;;  %202 = vst.msk [vmem:[#allocation2 + $0x18] sm:$0xff] %vm201_vm2, %v197_v41  ;;  %v2212_v41 = vld [vmem:[%s2719_s3 + $0x40] sm:$0xff] }
  0xd0   :  { %397 = vmatprep.subr.mxu0 %v2724_v3 }
  0xd1   :  { %398 = vmatpush1.msra.mxu0 %v1514_v12 }
  0xd2   :  { %399 = vmatprep.subr.mxu0 %v2724_v3 }
  0xd3   :  { %400 = vmatpush1.msra.mxu0 %v1522_v13 }
  0xd4   :  { %401 = vmatprep.subr.mxu0 %v2724_v3 }
  0xd5   :  { %402 = vmatpush1.msra.mxu0 %v1530_v14 }
  0xd6   :  { %403 = vmatprep.subr.mxu0 %v2724_v3  ;;  %v550_v42 = vld [vmem:[#allocation2 + $0x18] sm:$0xff] }
  0xd7   :  { %404 = vmatpush1.msra.mxu0 %v1539_v15 }
  0xd8   :  { %405 = vmatprep.subr.mxu0 %v2724_v3 }
  0xd9   :  { %406 = vmatpush1.msra.mxu0 %v1548_v16 }
  0xda   :  { %407 = vmatprep.subr.mxu0 %v2724_v3 }
  0xdb   :  { %408 = vmatpush1.msra.mxu0 %v1557_v17 }
  0xdc   :  { %409 = vmatprep.subr.mxu0 %v2724_v3 }
  0xdd   :  { %410 = vmatpush1.msra.mxu0 %v1566_v18 }
  0xde   :  { %411 = vmatprep.subr.mxu0 %v2724_v3 }
  0xdf   :  { %412 = vmatpush1.msra.mxu0 %v1575_v19 }
  0xe0   :  { %413 = vmatprep.subr.mxu0 %v2724_v3 }
  0xe1   :  { %414 = vmatpush1.msra.mxu0 %v1584_v20 }
  0xe2   :  { %415 = vmatprep.subr.mxu0 %v2724_v3 }
  0xe3   :  { %416 = vmatpush1.msra.mxu0 %v1593_v21 }
  0xe4   :  { %417 = vmatprep.subr.mxu0 %v2724_v3 }
  0xe5   :  { %418 = vmatpush1.msra.mxu0 %v1602_v22 }
  0xe6   :  { %419 = vmatprep.subr.mxu0 %v2724_v3 }
  0xe7   :  { %420 = vmatpush1.msra.mxu0 %v1611_v23 }
  0xe8   :  { %421 = vmatprep.subr.mxu0 %v2724_v3 }
  0xe9   :  { %422 = vmatpush1.msra.mxu0 %v1620_v24 }
  0xea   :  { %423 = vmatprep.subr.mxu0 %v2724_v3 }
  0xeb   :  { %424 = vmatpush1.msra.mxu0 %v1629_v25 }
  0xec   :  { %441 = vmatprep.subr.mxu0 %v2724_v3 }
  0xed   :  { %442 = vmatpush2.msra.mxu0 %v1638_v26 }
  0xee   :  { %443 = vmatprep.subr.mxu0 %v2724_v3 }
  0xef   :  { %444 = vmatpush2.msra.mxu0 %v1657_v27 }
  0xf0   :  { %445 = vmatprep.subr.mxu0 %v2724_v3 }
  0xf1   :  { %446 = vmatpush2.msra.mxu0 %v1665_v28 }
  0xf2   :  { %447 = vmatprep.subr.mxu0 %v2724_v3 }
  0xf3   :  { %448 = vmatpush2.msra.mxu0 %v1674_v29 }
  0xf4   :  { %449 = vmatprep.subr.mxu0 %v2724_v3 }
  0xf5   :  { %450 = vmatpush2.msra.mxu0 %v1683_v30 }
  0xf6   :  { %451 = vmatprep.subr.mxu0 %v2724_v3 }
  0xf7   :  { %452 = vmatpush2.msra.mxu0 %v1692_v31 }
  0xf8   :  { %453 = vmatprep.subr.mxu0 %v2724_v3 }
  0xf9   :  { %454 = vmatpush2.msra.mxu0 %v1701_v32 }
  0xfa   :  { %455 = vmatprep.subr.mxu0 %v2724_v3 }
  0xfb   :  { %456 = vmatpush2.msra.mxu0 %v1710_v33 }
  0xfc   :  { %458 = vmatmul.mubr.f32.vlgmr.msra.gmra.mxu0 %v195_v37  ;;  %554 = vmatprep.subr.mxu0 %v2724_v3  ;;  %v2025_v37 = vld [vmem:[%s2719_s3 + $0x200] sm:$0xff] }
  0xfd   :  { %555 = vmatpush1.msra.mxu0 %v1492_v8  ;;  %1391 = vmatprep.mubr.msk.f32.mxu0 %vm201_vm2, %v550_v42  ;;  %2833 = vst [vmem:[#allocation21_spill] sm:$0xff] %v2025_v37  ;;  %v2218_v42 = vld [vmem:[%s2719_s3 + $0x38] sm:$0xff] }
  0xfe   :  { %556 = vmatprep.subr.mxu0 %v2724_v3 }
  0xff   :  { %557 = vmatpush1.msra.mxu0 %v1506_v11 }
 0x100   :  { %558 = vmatprep.subr.mxu0 %v2724_v3 }
 0x101   :  { %559 = vmatpush1.msra.mxu0 %v1514_v12 }
 0x102   :  { %560 = vmatprep.subr.mxu0 %v2724_v3 }
 0x103   :  { %561 = vmatpush1.msra.mxu0 %v1522_v13 }
 0x104   :  { %562 = vmatprep.subr.mxu0 %v2724_v3 }
 0x105   :  { %563 = vmatpush1.msra.mxu0 %v1530_v14 }
 0x106   :  { %564 = vmatprep.subr.mxu0 %v2724_v3 }
 0x107   :  { %565 = vmatpush1.msra.mxu0 %v1539_v15 }
 0x108   :  { %566 = vmatprep.subr.mxu0 %v2724_v3 }
 0x109   :  { %567 = vmatpush1.msra.mxu0 %v1548_v16 }
 0x10a   :  { %568 = vmatprep.subr.mxu0 %v2724_v3 }
 0x10b   :  { %569 = vmatpush1.msra.mxu0 %v1557_v17 }
 0x10c   :  { %570 = vmatprep.subr.mxu0 %v2724_v3 }
 0x10d   :  { %571 = vmatpush1.msra.mxu0 %v1566_v18 }
 0x10e   :  { %572 = vmatprep.subr.mxu0 %v2724_v3 }
 0x10f   :  { %573 = vmatpush1.msra.mxu0 %v1575_v19 }
 0x110   :  { %574 = vmatprep.subr.mxu0 %v2724_v3 }
 0x111   :  { %575 = vmatpush1.msra.mxu0 %v1584_v20 }
 0x112   :  { %576 = vmatprep.subr.mxu0 %v2724_v3 }
 0x113   :  { %577 = vmatpush1.msra.mxu0 %v1593_v21 }
 0x114   :  { %578 = vmatprep.subr.mxu0 %v2724_v3 }
 0x115   :  { %579 = vmatpush1.msra.mxu0 %v1602_v22 }
 0x116   :  { %580 = vmatprep.subr.mxu0 %v2724_v3 }
 0x117   :  { %581 = vmatpush1.msra.mxu0 %v1611_v23 }
 0x118   :  { %582 = vmatprep.subr.mxu0 %v2724_v3 }
 0x119   :  { %583 = vmatpush1.msra.mxu0 %v1620_v24 }
 0x11a   :  { %584 = vmatprep.subr.mxu0 %v2724_v3 }
 0x11b   :  { %585 = vmatpush1.msra.mxu0 %v1629_v25 }
 0x11c   :  { %602 = vmatprep.subr.mxu0 %v2724_v3 }
 0x11d   :  { %603 = vmatpush2.msra.mxu0 %v1638_v26 }
 0x11e   :  { %604 = vmatprep.subr.mxu0 %v2724_v3 }
 0x11f   :  { %605 = vmatpush2.msra.mxu0 %v1657_v27 }
 0x120   :  { %606 = vmatprep.subr.mxu0 %v2724_v3 }
 0x121   :  { %607 = vmatpush2.msra.mxu0 %v1665_v28 }
 0x122   :  { %608 = vmatprep.subr.mxu0 %v2724_v3 }
 0x123   :  { %609 = vmatpush2.msra.mxu0 %v1674_v29 }
 0x124   :  { %610 = vmatprep.subr.mxu0 %v2724_v3 }
 0x125   :  { %611 = vmatpush2.msra.mxu0 %v1683_v30 }
 0x126   :  { %612 = vmatprep.subr.mxu0 %v2724_v3 }
 0x127   :  { %613 = vmatpush2.msra.mxu0 %v1692_v31 }
 0x128   :  { %614 = vmatprep.subr.mxu0 %v2724_v3 }
 0x129   :  { %615 = vmatpush2.msra.mxu0 %v1701_v32 }
 0x12a   :  { %616 = vmatprep.subr.mxu0 %v2724_v3 }
 0x12b   :  { %617 = vmatpush2.msra.mxu0 %v1710_v33 }
 0x12c   :  { %619 = vmatmul.mubr.f32.vlgmr.msra.gmra.mxu0 %v1717_v39  ;;  %796 = vmatprep.subr.mxu0 %v1821_v43  ;;  %v2200_v39 = vld [vmem:[%s2719_s3 + $0x50] sm:$0xff] }
 0x12d   :  { %797 = vmatpush1.msra.mxu0 %v1827_v44  ;;  %860 = vmatprep.mubr.f32.mxu0 %v2724_v3 }
 0x12e   :  { %798 = vmatprep.subr.mxu0 %v1833_v45 }
 0x12f   :  { %799 = vmatpush1.msra.mxu0 %v1840_v46 }
 0x130   :  { %800 = vmatprep.subr.mxu0 %v1846_v47 }
 0x131   :  { %801 = vmatpush1.msra.mxu0 %v1853_v48 }
 0x132   :  { %802 = vmatprep.subr.mxu0 %v1859_v49 }
 0x133   :  { %803 = vmatpush1.msra.mxu0 %v1865_v50 }
 0x134   :  { %804 = vmatprep.subr.mxu0 %v1871_v51 }
 0x135   :  { %805 = vmatpush1.msra.mxu0 %v1877_v52 }
 0x136   :  { %806 = vmatprep.subr.mxu0 %v1883_v53 }
 0x137   :  { %807 = vmatpush1.msra.mxu0 %v1889_v54 }
 0x138   :  { %808 = vmatprep.subr.mxu0 %v1895_v55 }
 0x139   :  { %809 = vmatpush1.msra.mxu0 %v1901_v56 }
 0x13a   :  { %810 = vmatprep.subr.mxu0 %v1907_v57 }
 0x13b   :  { %v309_v61 = vpop.permute.xlu0 %308  ;;  %811 = vmatpush1.msra.mxu0 %v1913_v58 }
 0x13c   :  { %812 = vmatprep.subr.mxu0 %v1919_v59 }
 0x13d   :  { %v1939_v0 = vpop.permute.xlu1 %469  ;;  %813 = vmatpush1.msra.mxu0 %v1925_v60 }
 0x13e   :  { %814 = vmatprep.subr.mxu0 %v1931_v62 }
 0x13f   :  { %v311_v4 = vpop.permute.xlu0 %310  ;;  %815 = vmatpush1.msra.mxu0 %v1937_v63 }
 0x140   :  { %v312_v5 = vsel %vm201_vm2, %v309_v61, %v311_v4  ;;  %1388 = vmatprep.mubr.msk.f32.mxu1 %vm201_vm2, %v311_v4  ;;  %816 = vmatprep.subr.mxu0 %v1945_v1  ;;  %v2224_v61 = vld [vmem:[%s2719_s3 + $0x30] sm:$0xff]  ;;  %v2236_v4 = vld [vmem:[%s2719_s3 + $0x20] sm:$0xff] }
 0x141   :  { %381 = vmatmul.mubr.f32.vlgmr.msra.gmra.mxu1 %v312_v5  ;;  %v1962_v7 = vpop.permute.xlu1 %471  ;;  %817 = vmatpush1.msra.mxu0 %v1951_v2  ;;  %2834 = vst [vmem:[#allocation22_spill] sm:$0xff] %v2224_v61  ;;  %2836 = vst [vmem:[#allocation24_spill] sm:$0xff] %v2236_v4  ;;  %v2242_v5 = vld [vmem:[%s2719_s3 + $0x18] sm:$0xff] }
 0x142   :  { %478 = vmatpush1.msra.mxu1 %v1492_v8  ;;  %1390 = vmatprep.mubr.msk.f32.mxu1 %vm201_vm2, %v1962_v7  ;;  %v1990_v8 = vld [vmem:[%s2719_s3 + $0x228] sm:$0xff]  ;;  %2837 = vst [vmem:[#allocation25_spill] sm:$0xff] %v2242_v5 }
 0x143   :  { %479 = vmatprep.subr.mxu1 %v2724_v3  ;;  %818 = vmatprep.subr.mxu0 %v1960_v6  ;;  %2828 = vst [vmem:[#allocation16_spill] sm:$0xff] %v1990_v8 }
 0x144   :  { %480 = vmatpush1.msra.mxu1 %v1506_v11  ;;  %819 = vmatpush1.msra.mxu0 %v1968_v9  ;;  %v2004_v11 = vld [vmem:[%s2719_s3 + $0x218] sm:$0xff] }
 0x145   :  { %481 = vmatprep.subr.mxu1 %v2724_v3  ;;  %820 = vmatprep.subr.mxu0 %v1976_v10  ;;  %2830 = vst [vmem:[#allocation18_spill] sm:$0xff] %v2004_v11 }
 0x146   :  { %482 = vmatpush1.msra.mxu1 %v1514_v12  ;;  %821 = vmatpush1.msra.mxu0 %v1983_v34  ;;  %v2018_v12 = vld [vmem:[%s2719_s3 + $0x208] sm:$0xff] }
 0x147   :  { %483 = vmatprep.subr.mxu1 %v2724_v3  ;;  %822 = vmatprep.subr.mxu0 %v1990_v8  ;;  %2832 = vst [vmem:[#allocation20_spill] sm:$0xff] %v2018_v12 }
 0x148   :  { %484 = vmatpush1.msra.mxu1 %v1522_v13  ;;  %823 = vmatpush1.msra.mxu0 %v1997_v35  ;;  %v2071_v13 = vld [vmem:[%s2719_s3 + $0xf8] sm:$0xff] }
 0x149   :  { %485 = vmatprep.subr.mxu1 %v2724_v3  ;;  %824 = vmatprep.subr.mxu0 %v2004_v11 }
 0x14a   :  { %486 = vmatpush1.msra.mxu1 %v1530_v14  ;;  %825 = vmatpush1.msra.mxu0 %v2011_v36  ;;  %v2077_v14 = vld [vmem:[%s2719_s3 + $0xf0] sm:$0xff] }
 0x14b   :  { %487 = vmatprep.subr.mxu1 %v2724_v3  ;;  %826 = vmatprep.subr.mxu0 %v2018_v12 }
 0x14c   :  { %488 = vmatpush1.msra.mxu1 %v1539_v15  ;;  %827 = vmatpush1.msra.mxu0 %v2025_v37  ;;  %v473_v15 = vsel %vm201_vm2, %v1939_v0, %v1962_v7  ;;  %v2230_v0 = vld [vmem:[%s2719_s3 + $0x28] sm:$0xff]  ;;  %v2248_v7 = vld [vmem:[%s2719_s3 + $0x10] sm:$0xff] }
 0x14d   :  { %489 = vmatprep.subr.mxu1 %v2724_v3  ;;  %945 = vmatprep.subr.mxu0 %v1821_v43  ;;  %2835 = vst [vmem:[#allocation23_spill] sm:$0xff] %v2230_v0  ;;  %2838 = vst [vmem:[#allocation26_spill] sm:$0xff] %v2248_v7  ;;  %v2262_v43 = vld [vmem:[%s2719_s3] sm:$0xff] }
 0x14e   :  { %490 = vmatpush1.msra.mxu1 %v1548_v16  ;;  %v2086_v16 = vld [vmem:[%s2719_s3 + $0xe8] sm:$0xff]  ;;  %2840 = vst [vmem:[#allocation28_spill] sm:$0xff] %v2262_v43 }
 0x14f   :  { %491 = vmatprep.subr.mxu1 %v2724_v3 }
 0x150   :  { %492 = vmatpush1.msra.mxu1 %v1557_v17  ;;  %v2092_v17 = vld [vmem:[%s2719_s3 + $0xe0] sm:$0xff] }
 0x151   :  { %493 = vmatprep.subr.mxu1 %v2724_v3 }
 0x152   :  { %494 = vmatpush1.msra.mxu1 %v1566_v18  ;;  %v2098_v18 = vld [vmem:[%s2719_s3 + $0xd8] sm:$0xff] }
 0x153   :  { %495 = vmatprep.subr.mxu1 %v2724_v3 }
 0x154   :  { %496 = vmatpush1.msra.mxu1 %v1575_v19  ;;  %v2104_v19 = vld [vmem:[%s2719_s3 + $0xd0] sm:$0xff] }
 0x155   :  { %497 = vmatprep.subr.mxu1 %v2724_v3 }
 0x156   :  { %498 = vmatpush1.msra.mxu1 %v1584_v20  ;;  %v2110_v20 = vld [vmem:[%s2719_s3 + $0xc8] sm:$0xff] }
 0x157   :  { %499 = vmatprep.subr.mxu1 %v2724_v3 }
 0x158   :  { %500 = vmatpush1.msra.mxu1 %v1593_v21  ;;  %v2116_v21 = vld [vmem:[%s2719_s3 + $0xc0] sm:$0xff] }
 0x159   :  { %501 = vmatprep.subr.mxu1 %v2724_v3 }
 0x15a   :  { %502 = vmatpush1.msra.mxu1 %v1602_v22  ;;  %v2122_v22 = vld [vmem:[%s2719_s3 + $0xb8] sm:$0xff] }
 0x15b   :  { %503 = vmatprep.subr.mxu1 %v2724_v3 }
 0x15c   :  { %504 = vmatpush1.msra.mxu1 %v1611_v23  ;;  %v2128_v23 = vld [vmem:[%s2719_s3 + $0xb0] sm:$0xff] }
 0x15d   :  { %505 = vmatprep.subr.mxu1 %v2724_v3 }
 0x15e   :  { %506 = vmatpush1.msra.mxu1 %v1620_v24  ;;  %v2134_v24 = vld [vmem:[%s2719_s3 + $0xa8] sm:$0xff] }
 0x15f   :  { %507 = vmatprep.subr.mxu1 %v2724_v3 }
 0x160   :  { %508 = vmatpush1.msra.mxu1 %v1629_v25  ;;  %v2140_v25 = vld [vmem:[%s2719_s3 + $0xa0] sm:$0xff] }
 0x161   :  { %525 = vmatprep.subr.mxu1 %v2724_v3 }
 0x162   :  { %526 = vmatpush2.msra.mxu1 %v1638_v26  ;;  %v2146_v26 = vld [vmem:[%s2719_s3 + $0x98] sm:$0xff] }
 0x163   :  { %527 = vmatprep.subr.mxu1 %v2724_v3 }
 0x164   :  { %528 = vmatpush2.msra.mxu1 %v1657_v27  ;;  %v2152_v27 = vld [vmem:[%s2719_s3 + $0x90] sm:$0xff] }
 0x165   :  { %529 = vmatprep.subr.mxu1 %v2724_v3 }
 0x166   :  { %530 = vmatpush2.msra.mxu1 %v1665_v28  ;;  %v2158_v28 = vld [vmem:[%s2719_s3 + $0x88] sm:$0xff] }
 0x167   :  { %531 = vmatprep.subr.mxu1 %v2724_v3 }
 0x168   :  { %532 = vmatpush2.msra.mxu1 %v1674_v29  ;;  %v2164_v29 = vld [vmem:[%s2719_s3 + $0x80] sm:$0xff] }
 0x169   :  { %533 = vmatprep.subr.mxu1 %v2724_v3 }
 0x16a   :  { %534 = vmatpush2.msra.mxu1 %v1683_v30  ;;  %v2170_v30 = vld [vmem:[%s2719_s3 + $0x78] sm:$0xff] }
 0x16b   :  { %535 = vmatprep.subr.mxu1 %v2724_v3 }
 0x16c   :  { %536 = vmatpush2.msra.mxu1 %v1692_v31  ;;  %v2176_v31 = vld [vmem:[%s2719_s3 + $0x70] sm:$0xff] }
 0x16d   :  { %537 = vmatprep.subr.mxu1 %v2724_v3 }
 0x16e   :  { %538 = vmatpush2.msra.mxu1 %v1701_v32  ;;  %v2182_v32 = vld [vmem:[%s2719_s3 + $0x68] sm:$0xff] }
 0x16f   :  { %539 = vmatprep.subr.mxu1 %v2724_v3  ;;  %v2256_v3 = vld [vmem:[%s2719_s3 + $0x8] sm:$0xff] }
 0x170   :  { %540 = vmatpush2.msra.mxu1 %v1710_v33  ;;  %v2188_v33 = vld [vmem:[%s2719_s3 + $0x60] sm:$0xff]  ;;  %2839 = vst [vmem:[#allocation27_spill] sm:$0xff] %v2256_v3 }
 0x171   :  { %542 = vmatmul.mubr.f32.vlgmr.msra.gmra.mxu1 %v473_v15  ;;  %725 = vmatprep.subr.mxu1 %v2071_v13 }
 0x172   :  { %726 = vmatpush1.msra.mxu1 %v2077_v14 }
 0x173   :  { %727 = vmatprep.subr.mxu1 %v2086_v16 }
 0x174   :  { %728 = vmatpush1.msra.mxu1 %v2092_v17 }
 0x175   :  { %729 = vmatprep.subr.mxu1 %v2098_v18 }
 0x176   :  { %730 = vmatpush1.msra.mxu1 %v2104_v19 }
 0x177   :  { %731 = vmatprep.subr.mxu1 %v2110_v20 }
 0x178   :  { %732 = vmatpush1.msra.mxu1 %v2116_v21 }
 0x179   :  { %733 = vmatprep.subr.mxu1 %v2122_v22 }
 0x17a   :  { %734 = vmatpush1.msra.mxu1 %v2128_v23 }
 0x17b   :  { %735 = vmatprep.subr.mxu1 %v2134_v24 }
 0x17c   :  { %736 = vmatpush1.msra.mxu1 %v2140_v25 }
 0x17d   :  { %737 = vmatprep.subr.mxu1 %v2146_v26 }
 0x17e   :  { %738 = vmatpush1.msra.mxu1 %v2152_v27 }
 0x17f   :  { %739 = vmatprep.subr.mxu1 %v2158_v28 }
 0x180   :  { %740 = vmatpush1.msra.mxu1 %v2164_v29 }
 0x181   :  { %741 = vmatprep.subr.mxu1 %v2170_v30 }
 0x182   :  { %742 = vmatpush1.msra.mxu1 %v2176_v31 }
 0x183   :  { %743 = vmatprep.subr.mxu1 %v2182_v32 }
 0x184   :  { %744 = vmatpush1.msra.mxu1 %v2188_v33 }
 0x185   :  { %745 = vmatprep.subr.mxu1 %v2194_v38 }
 0x186   :  { %746 = vmatpush1.msra.mxu1 %v2200_v39 }
 0x187   :  { %747 = vmatprep.subr.mxu1 %v2206_v40 }
 0x188   :  { %748 = vmatpush1.msra.mxu1 %v2212_v41 }
 0x189   :  { %749 = vmatprep.subr.mxu1 %v2218_v42 }
 0x18a   :  { %750 = vmatpush1.msra.mxu1 %v2224_v61  ;;  %v2268_v61 = vld [vmem:[%s2719_s3 + $0x1f8] sm:$0xff] }
 0x18b   :  { %751 = vmatprep.subr.mxu1 %v2230_v0  ;;  %2841 = vst [vmem:[#allocation29_spill] sm:$0xff] %v2268_v61 }
 0x18c   :  { %v2250_v15 = vpop.f32.mrf.mxu0  ;;  %752 = vmatpush1.msra.mxu1 %v2236_v4  ;;  %v2274_v4 = vld [vmem:[%s2719_s3 + $0x1f0] sm:$0xff] }
 0x18d   :  { %753 = vmatprep.subr.mxu1 %v2242_v5  ;;  %2842 = vst [vmem:[#allocation30_spill] sm:$0xff] %v2274_v4 }
 0x18e   :  { %v300_v0 = vpop.f32.mrf.mxu0  ;;  %754 = vmatpush1.msra.mxu1 %v2248_v7  ;;  %v2286_v7 = vld [vmem:[%s2719_s3 + $0x1e0] sm:$0xff] }
 0x18f   :  { %755 = vmatprep.subr.mxu1 %v2256_v3  ;;  %v2280_v0 = vld [vmem:[%s2719_s3 + $0x1e8] sm:$0xff]  ;;  %2844 = vst [vmem:[#allocation32_spill] sm:$0xff] %v2286_v7  ;;  %v2292_v3 = vld [vmem:[%s2719_s3 + $0x1d8] sm:$0xff] }
 0x190   :  { %756 = vmatpush1.msra.mxu1 %v2262_v43  ;;  %2843 = vst [vmem:[#allocation31_spill] sm:$0xff] %v2280_v0  ;;  %2845 = vst [vmem:[#allocation33_spill] sm:$0xff] %v2292_v3  ;;  %v2298_v43 = vld [vmem:[%s2719_s3 + $0x1d0] sm:$0xff] }
 0x191   :  { %757 = vmatprep.subr.mxu1 %v2268_v61  ;;  %2846 = vst [vmem:[#allocation34_spill] sm:$0xff] %v2298_v43  ;;  %v2304_v61 = vld [vmem:[%s2719_s3 + $0x1c8] sm:$0xff] }
 0x192   :  { %758 = vmatpush2.msra.mxu1 %v2274_v4  ;;  %2847 = vst [vmem:[#allocation35_spill] sm:$0xff] %v2304_v61  ;;  %v2310_v4 = vld [vmem:[%s2719_s3 + $0x1c0] sm:$0xff] }
 0x193   :  { %759 = vmatprep.subr.mxu1 %v2280_v0  ;;  %2848 = vst [vmem:[#allocation36_spill] sm:$0xff] %v2310_v4  ;;  %v2316_v0 = vld [vmem:[%s2719_s3 + $0x1b8] sm:$0xff] }
 0x194   :  { %760 = vmatpush2.msra.mxu1 %v2286_v7  ;;  %2849 = vst [vmem:[#allocation37_spill] sm:$0xff] %v2316_v0  ;;  %v2322_v7 = vld [vmem:[%s2719_s3 + $0x1b0] sm:$0xff] }
 0x195   :  { %761 = vmatprep.subr.mxu1 %v2292_v3  ;;  %2850 = vst [vmem:[#allocation38_spill] sm:$0xff] %v2322_v7  ;;  %v2328_v3 = vld [vmem:[%s2719_s3 + $0x1a8] sm:$0xff] }
 0x196   :  { %762 = vmatpush2.msra.mxu1 %v2298_v43  ;;  %2851 = vst [vmem:[#allocation39_spill] sm:$0xff] %v2328_v3  ;;  %v2334_v43 = vld [vmem:[%s2719_s3 + $0x1a0] sm:$0xff] }
 0x197   :  { %763 = vmatprep.subr.mxu1 %v2304_v61  ;;  %2852 = vst [vmem:[#allocation40_spill] sm:$0xff] %v2334_v43  ;;  %v2340_v61 = vld [vmem:[%s2719_s3 + $0x198] sm:$0xff] }
 0x198   :  { %764 = vmatpush2.msra.mxu1 %v2310_v4  ;;  %2853 = vst [vmem:[#allocation41_spill] sm:$0xff] %v2340_v61  ;;  %v2346_v4 = vld [vmem:[%s2719_s3 + $0x190] sm:$0xff] }
 0x199   :  { %765 = vmatprep.subr.mxu1 %v2316_v0  ;;  %2854 = vst [vmem:[#allocation42_spill] sm:$0xff] %v2346_v4  ;;  %v2352_v0 = vld [vmem:[%s2719_s3 + $0x188] sm:$0xff] }
 0x19a   :  { %766 = vmatpush2.msra.mxu1 %v2322_v7  ;;  %2855 = vst [vmem:[#allocation43_spill] sm:$0xff] %v2352_v0  ;;  %v2358_v7 = vld [vmem:[%s2719_s3 + $0x180] sm:$0xff] }
 0x19b   :  { %767 = vmatprep.subr.mxu1 %v2328_v3  ;;  %2856 = vst [vmem:[#allocation44_spill] sm:$0xff] %v2358_v7  ;;  %v2364_v3 = vld [vmem:[%s2719_s3 + $0x178] sm:$0xff] }
 0x19c   :  { %768 = vmatpush2.msra.mxu1 %v2334_v43  ;;  %2857 = vst [vmem:[#allocation45_spill] sm:$0xff] %v2364_v3  ;;  %v2370_v43 = vld [vmem:[%s2719_s3 + $0x170] sm:$0xff] }
 0x19d   :  { %769 = vmatprep.subr.mxu1 %v2340_v61  ;;  %2858 = vst [vmem:[#allocation46_spill] sm:$0xff] %v2370_v43  ;;  %v2376_v61 = vld [vmem:[%s2719_s3 + $0x168] sm:$0xff] }
 0x19e   :  { %770 = vmatpush2.msra.mxu1 %v2346_v4  ;;  %2859 = vst [vmem:[#allocation47_spill] sm:$0xff] %v2376_v61  ;;  %v2382_v4 = vld [vmem:[%s2719_s3 + $0x160] sm:$0xff] }
 0x19f   :  { %771 = vmatprep.subr.mxu1 %v2352_v0  ;;  %2860 = vst [vmem:[#allocation48_spill] sm:$0xff] %v2382_v4  ;;  %v2388_v0 = vld [vmem:[%s2719_s3 + $0x158] sm:$0xff] }
 0x1a0   :  { %772 = vmatpush2.msra.mxu1 %v2358_v7  ;;  %2861 = vst [vmem:[#allocation49_spill] sm:$0xff] %v2388_v0  ;;  %v2394_v7 = vld [vmem:[%s2719_s3 + $0x150] sm:$0xff] }
 0x1a1   :  { %773 = vmatprep.subr.mxu1 %v2364_v3  ;;  %2862 = vst [vmem:[#allocation50_spill] sm:$0xff] %v2394_v7  ;;  %v2400_v3 = vld [vmem:[%s2719_s3 + $0x148] sm:$0xff] }
 0x1a2   :  { %774 = vmatpush2.msra.mxu1 %v2370_v43  ;;  %2863 = vst [vmem:[#allocation51_spill] sm:$0xff] %v2400_v3  ;;  %v2406_v43 = vld [vmem:[%s2719_s3 + $0x140] sm:$0xff] }
 0x1a3   :  { %775 = vmatprep.subr.mxu1 %v2376_v61  ;;  %2864 = vst [vmem:[#allocation52_spill] sm:$0xff] %v2406_v43  ;;  %v2412_v61 = vld [vmem:[%s2719_s3 + $0x138] sm:$0xff] }
 0x1a4   :  { %776 = vmatpush2.msra.mxu1 %v2382_v4  ;;  %2865 = vst [vmem:[#allocation53_spill] sm:$0xff] %v2412_v61  ;;  %v2418_v4 = vld [vmem:[%s2719_s3 + $0x130] sm:$0xff] }
 0x1a5   :  { %777 = vmatprep.subr.mxu1 %v2388_v0  ;;  %2866 = vst [vmem:[#allocation54_spill] sm:$0xff] %v2418_v4  ;;  %v2424_v0 = vld [vmem:[%s2719_s3 + $0x128] sm:$0xff] }
 0x1a6   :  { %778 = vmatpush2.msra.mxu1 %v2394_v7  ;;  %2867 = vst [vmem:[#allocation55_spill] sm:$0xff] %v2424_v0  ;;  %v2430_v7 = vld [vmem:[%s2719_s3 + $0x120] sm:$0xff] }
 0x1a7   :  { %779 = vmatprep.subr.mxu1 %v2400_v3  ;;  %2868 = vst [vmem:[#allocation56_spill] sm:$0xff] %v2430_v7  ;;  %v2436_v3 = vld [vmem:[%s2719_s3 + $0x118] sm:$0xff] }
 0x1a8   :  { %780 = vmatpush2.msra.mxu1 %v2406_v43  ;;  %2869 = vst [vmem:[#allocation57_spill] sm:$0xff] %v2436_v3  ;;  %v2442_v43 = vld [vmem:[%s2719_s3 + $0x110] sm:$0xff] }
 0x1a9   :  { %781 = vmatprep.subr.mxu1 %v2412_v61  ;;  %v2448_v61 = vld [vmem:[%s2719_s3 + $0x108] sm:$0xff] }
 0x1aa   :  { %782 = vmatpush2.msra.mxu1 %v2418_v4  ;;  %v2454_v4 = vld [vmem:[%s2719_s3 + $0x100] sm:$0xff] }
 0x1ab   :  { %783 = vmatprep.subr.mxu1 %v2424_v0 }
 0x1ac   :  { %784 = vmatpush2.msra.mxu1 %v2430_v7 }
 0x1ad   :  { %785 = vmatprep.subr.mxu1 %v2436_v3  ;;  %v2871_v3 = vmov 0.0  }
 0x1ae   :  { %786 = vmatpush2.msra.mxu1 %v2442_v43 }
 0x1af   :  { %787 = vmatprep.subr.mxu1 %v2448_v61 }
 0x1b0   :  { %788 = vmatpush2.msra.mxu1 %v2454_v4 }
 0x1b1   :  { %874 = vmatprep.subr.mxu1 %v2071_v13 }
 0x1bc   :  { %v459_v7 = vpop.f32.mrf.mxu0 }
 0x1bd   :  { %v2460_v0 = vmax.f32 %v459_v7, 0.0 }
 0x1be   :  { %v461_v5 = vpop.f32.mrf.mxu0 }
 0x1bf   :  { %2870 = vst [vmem:[#allocation58_spill] sm:$0xff] %v2460_v0  ;;  %861 = vmatmul.mubr.f32.vlgmr.msra.gmra.mxu0 %v2460_v0 }
 0x1c0   :  { %946 = vmatpush1.msra.mxu0 %v1827_v44  ;;  %1009 = vmatprep.mubr.f32.mxu0 %v2871_v3 }
 0x1c1   :  { %947 = vmatprep.subr.mxu0 %v1833_v45 }
 0x1c2   :  { %948 = vmatpush1.msra.mxu0 %v1840_v46 }
 0x1c3   :  { %949 = vmatprep.subr.mxu0 %v1846_v47 }
 0x1c4   :  { %950 = vmatpush1.msra.mxu0 %v1853_v48 }
 0x1c5   :  { %951 = vmatprep.subr.mxu0 %v1859_v49 }
 0x1c6   :  { %952 = vmatpush1.msra.mxu0 %v1865_v50 }
 0x1c7   :  { %953 = vmatprep.subr.mxu0 %v1871_v51 }
 0x1c8   :  { %954 = vmatpush1.msra.mxu0 %v1877_v52 }
 0x1c9   :  { %955 = vmatprep.subr.mxu0 %v1883_v53 }
 0x1ca   :  { %956 = vmatpush1.msra.mxu0 %v1889_v54 }
 0x1cb   :  { %957 = vmatprep.subr.mxu0 %v1895_v55 }
 0x1cc   :  { %958 = vmatpush1.msra.mxu0 %v1901_v56 }
 0x1cd   :  { %959 = vmatprep.subr.mxu0 %v1907_v57 }
 0x1ce   :  { %960 = vmatpush1.msra.mxu0 %v1913_v58 }
 0x1cf   :  { %961 = vmatprep.subr.mxu0 %v1919_v59  ;;  %v2892_v59 = vld [vmem:[#allocation41_spill] sm:$0xff] }
 0x1d0   :  { %962 = vmatpush1.msra.mxu0 %v1925_v60 }
 0x1d1   :  { %963 = vmatprep.subr.mxu0 %v1931_v62  ;;  %v2891_v62 = vld [vmem:[#allocation40_spill] sm:$0xff] }
 0x1d2   :  { %964 = vmatpush1.msra.mxu0 %v1937_v63  ;;  %v2890_v63 = vld [vmem:[#allocation39_spill] sm:$0xff] }
 0x1d3   :  { %965 = vmatprep.subr.mxu0 %v1945_v1  ;;  %v2889_v1 = vld [vmem:[#allocation38_spill] sm:$0xff] }
 0x1d4   :  { %966 = vmatpush1.msra.mxu0 %v1951_v2  ;;  %v2888_v2 = vld [vmem:[#allocation37_spill] sm:$0xff] }
 0x1d5   :  { %967 = vmatprep.subr.mxu0 %v1960_v6  ;;  %v2887_v6 = vld [vmem:[#allocation36_spill] sm:$0xff] }
 0x1d6   :  { %968 = vmatpush1.msra.mxu0 %v1968_v9  ;;  %v2886_v9 = vld [vmem:[#allocation35_spill] sm:$0xff] }
 0x1d7   :  { %969 = vmatprep.subr.mxu0 %v1976_v10  ;;  %v2885_v10 = vld [vmem:[#allocation34_spill] sm:$0xff] }
 0x1d8   :  { %970 = vmatpush1.msra.mxu0 %v1983_v34 }
 0x1d9   :  { %971 = vmatprep.subr.mxu0 %v1990_v8  ;;  %v302_v8 = vmax.f32 %v2250_v15, 0.0  ;;  %v2876_v15 = vld [vmem:[#allocation25_spill] sm:$0xff] }
 0x1da   :  { %972 = vmatpush1.msra.mxu0 %v1997_v35 }
 0x1db   :  { %973 = vmatprep.subr.mxu0 %v2004_v11  ;;  %v2884_v11 = vld [vmem:[#allocation33_spill] sm:$0xff] }
 0x1dc   :  { %974 = vmatpush1.msra.mxu0 %v2011_v36  ;;  %v2883_v36 = vld [vmem:[#allocation32_spill] sm:$0xff] }
 0x1dd   :  { %975 = vmatprep.subr.mxu0 %v2018_v12  ;;  %v2881_v12 = vld [vmem:[#allocation30_spill] sm:$0xff] }
 0x1de   :  { %976 = vmatpush1.msra.mxu0 %v2025_v37  ;;  %v2880_v37 = vld [vmem:[#allocation29_spill] sm:$0xff] }
 0x1df   :  { %1023 = vmatprep.subr.mxu0 %v2071_v13  ;;  %v2875_v13 = vld [vmem:[#allocation24_spill] sm:$0xff] }
 0x1ec   :  { %v2496_v5 = vpop.f32.mrf.mxu0 }
 0x1ed   :  { %2872 = vst [vmem:[#allocation59_spill] sm:$0xff] %v2496_v5  ;;  %v2882_v5 = vld [vmem:[#allocation31_spill] sm:$0xff] }
 0x1ee   :  { %v622_v7 = vpop.f32.mrf.mxu0 }
 0x1ef   :  { %v2877_v7 = vld [vmem:[#allocation26_spill] sm:$0xff] }
 0x201   :  { %v2498_v3 = vpop.f32.mrf.mxu1 }
 0x202   :  { %v2802_v34 = vmax.f32 %v2498_v3, 0.0 }
 0x203   :  { %v384_v35 = vpop.f32.mrf.mxu1 }
 0x204   :  { %789 = vmatprep.mubr.f32.mxu1 %v2802_v34  ;;  %v2874_v35 = vld [vmem:[#allocation23_spill] sm:$0xff] }
 0x205   :  { %790 = vmatmul.mubr.f32.vlgmr.msra.gmra.mxu1 %v302_v8  ;;  %v2873_v8 = vld [vmem:[#allocation22_spill] sm:$0xff]  ;;  %v2878_v34 = vld [vmem:[#allocation27_spill] sm:$0xff] }
 0x206   :  { %875 = vmatpush1.msra.mxu1 %v2077_v14  ;;  %938 = vmatprep.mubr.f32.mxu1 %v2460_v0  ;;  %v2879_v0 = vld [vmem:[#allocation28_spill] sm:$0xff] }
 0x207   :  { %876 = vmatprep.subr.mxu1 %v2086_v16 }
 0x208   :  { %877 = vmatpush1.msra.mxu1 %v2092_v17 }
 0x209   :  { %878 = vmatprep.subr.mxu1 %v2098_v18 }
 0x20a   :  { %879 = vmatpush1.msra.mxu1 %v2104_v19 }
 0x20b   :  { %880 = vmatprep.subr.mxu1 %v2110_v20 }
 0x20c   :  { %881 = vmatpush1.msra.mxu1 %v2116_v21 }
 0x20d   :  { %882 = vmatprep.subr.mxu1 %v2122_v22 }
 0x20e   :  { %883 = vmatpush1.msra.mxu1 %v2128_v23 }
 0x20f   :  { %884 = vmatprep.subr.mxu1 %v2134_v24 }
 0x210   :  { %885 = vmatpush1.msra.mxu1 %v2140_v25 }
 0x211   :  { %886 = vmatprep.subr.mxu1 %v2146_v26 }
 0x212   :  { %887 = vmatpush1.msra.mxu1 %v2152_v27 }
 0x213   :  { %888 = vmatprep.subr.mxu1 %v2158_v28 }
 0x214   :  { %889 = vmatpush1.msra.mxu1 %v2164_v29 }
 0x215   :  { %890 = vmatprep.subr.mxu1 %v2170_v30 }
 0x216   :  { %891 = vmatpush1.msra.mxu1 %v2176_v31 }
 0x217   :  { %892 = vmatprep.subr.mxu1 %v2182_v32 }
 0x218   :  { %893 = vmatpush1.msra.mxu1 %v2188_v33 }
 0x219   :  { %894 = vmatprep.subr.mxu1 %v2194_v38 }
 0x21a   :  { %895 = vmatpush1.msra.mxu1 %v2200_v39 }
 0x21b   :  { %896 = vmatprep.subr.mxu1 %v2206_v40 }
 0x21c   :  { %897 = vmatpush1.msra.mxu1 %v2212_v41 }
 0x21d   :  { %898 = vmatprep.subr.mxu1 %v2218_v42 }
 0x21e   :  { %899 = vmatpush1.msra.mxu1 %v2873_v8 }
 0x21f   :  { %900 = vmatprep.subr.mxu1 %v2874_v35 }
 0x220   :  { %901 = vmatpush1.msra.mxu1 %v2875_v13 }
 0x221   :  { %902 = vmatprep.subr.mxu1 %v2876_v15 }
 0x222   :  { %903 = vmatpush1.msra.mxu1 %v2877_v7 }
 0x223   :  { %904 = vmatprep.subr.mxu1 %v2878_v34 }
 0x224   :  { %905 = vmatpush1.msra.mxu1 %v2879_v0 }
 0x225   :  { %906 = vmatprep.subr.mxu1 %v2880_v37 }
 0x226   :  { %907 = vmatpush2.msra.mxu1 %v2881_v12 }
 0x227   :  { %908 = vmatprep.subr.mxu1 %v2882_v5  ;;  %v2893_v5 = vld [vmem:[#allocation42_spill] sm:$0xff] }
 0x228   :  { %909 = vmatpush2.msra.mxu1 %v2883_v36 }
 0x229   :  { %910 = vmatprep.subr.mxu1 %v2884_v11 }
 0x22a   :  { %911 = vmatpush2.msra.mxu1 %v2885_v10  ;;  %v2894_v10 = vld [vmem:[#allocation43_spill] sm:$0xff] }
 0x22b   :  { %912 = vmatprep.subr.mxu1 %v2886_v9  ;;  %v2895_v9 = vld [vmem:[#allocation44_spill] sm:$0xff] }
 0x22c   :  { %913 = vmatpush2.msra.mxu1 %v2887_v6 }
 0x22d   :  { %914 = vmatprep.subr.mxu1 %v2888_v2  ;;  %v2896_v2 = vld [vmem:[#allocation45_spill] sm:$0xff] }
 0x22e   :  { %915 = vmatpush2.msra.mxu1 %v2889_v1 }
 0x22f   :  { %916 = vmatprep.subr.mxu1 %v2890_v63 }
 0x230   :  { %917 = vmatpush2.msra.mxu1 %v2891_v62  ;;  %v2897_v62 = vld [vmem:[#allocation46_spill] sm:$0xff] }
 0x231   :  { %v543_v60 = vpop.f32.mrf.mxu1  ;;  %918 = vmatprep.subr.mxu1 %v2892_v59 }
 0x232   :  { %v547_v36 = vmax.f32 %v543_v60, 0.0  ;;  %919 = vmatpush2.msra.mxu1 %v2893_v5  ;;  %v2898_v60 = vld [vmem:[#allocation47_spill] sm:$0xff] }
 0x233   :  { %v545_v11 = vpop.f32.mrf.mxu1  ;;  %920 = vmatprep.subr.mxu1 %v2894_v10 }
 0x234   :  { %921 = vmatpush2.msra.mxu1 %v2895_v9  ;;  %1010 = vmatmul.mubr.f32.vlgmr.msra.gmra.mxu0 %v547_v36  ;;  %v2899_v11 = vld [vmem:[#allocation48_spill] sm:$0xff]  ;;  %v2900_v9 = vld [vmem:[#allocation49_spill] sm:$0xff] }
 0x235   :  { %1024 = vmatpush1.msra.mxu0 %v2077_v14  ;;  %922 = vmatprep.subr.mxu1 %v2896_v2  ;;  %v2901_v14 = vld [vmem:[#allocation50_spill] sm:$0xff] }
 0x236   :  { %1025 = vmatprep.subr.mxu0 %v2086_v16  ;;  %1087 = vmatprep.mubr.f32.mxu0 %v547_v36  ;;  %v2902_v36 = vld [vmem:[#allocation51_spill] sm:$0xff]  ;;  %v2903_v16 = vld [vmem:[#allocation52_spill] sm:$0xff] }
 0x237   :  { %923 = vmatpush2.msra.mxu1 %v2897_v62  ;;  %1026 = vmatpush1.msra.mxu0 %v2092_v17  ;;  %v2904_v17 = vld [vmem:[#allocation53_spill] sm:$0xff] }
 0x238   :  { %924 = vmatprep.subr.mxu1 %v2898_v60  ;;  %1027 = vmatprep.subr.mxu0 %v2098_v18  ;;  %v2905_v18 = vld [vmem:[#allocation54_spill] sm:$0xff] }
 0x239   :  { %925 = vmatpush2.msra.mxu1 %v2899_v11  ;;  %1028 = vmatpush1.msra.mxu0 %v2104_v19  ;;  %v2906_v19 = vld [vmem:[#allocation55_spill] sm:$0xff] }
 0x23a   :  { %926 = vmatprep.subr.mxu1 %v2900_v9  ;;  %1029 = vmatprep.subr.mxu0 %v2110_v20  ;;  %v2907_v20 = vld [vmem:[#allocation56_spill] sm:$0xff] }
 0x23b   :  { %927 = vmatpush2.msra.mxu1 %v2901_v14  ;;  %1030 = vmatpush1.msra.mxu0 %v2116_v21  ;;  %v2908_v21 = vld [vmem:[#allocation57_spill] sm:$0xff] }
 0x23c   :  { %928 = vmatprep.subr.mxu1 %v2902_v36  ;;  %1031 = vmatprep.subr.mxu0 %v2122_v22  ;;  %v2909_v22 = vmax.f32 %v2498_v3, 0.0  ;;  %v2911_v3 = vld [vmem:[#allocation31_spill] sm:$0xff] }
 0x23d   :  { %929 = vmatpush2.msra.mxu1 %v2903_v16  ;;  %1032 = vmatpush1.msra.mxu0 %v2128_v23  ;;  %v2910_v23 = vld [vmem:[#allocation5_spill] sm:$0xff] }
 0x23e   :  { %930 = vmatprep.subr.mxu1 %v2904_v17  ;;  %1033 = vmatprep.subr.mxu0 %v2134_v24  ;;  %v2933_v24 = vld [vmem:[#allocation59_spill] sm:$0xff] }
 0x23f   :  { %931 = vmatpush2.msra.mxu1 %v2905_v18  ;;  %1034 = vmatpush1.msra.mxu0 %v2140_v25  ;;  %v624_v25 = vmax.f32 %v2933_v24, 0.0 }
 0x240   :  { %932 = vmatprep.subr.mxu1 %v2906_v19  ;;  %1035 = vmatprep.subr.mxu0 %v2146_v26  ;;  %v2934_v26 = vld [vmem:[#allocation20_spill] sm:$0xff] }
 0x241   :  { %933 = vmatpush2.msra.mxu1 %v2907_v20  ;;  %1036 = vmatpush1.msra.mxu0 %v2152_v27  ;;  %v2936_v27 = vmov 0.0  }
 0x242   :  { %934 = vmatprep.subr.mxu1 %v2908_v21  ;;  %1037 = vmatprep.subr.mxu0 %v2158_v28 }
 0x243   :  { %935 = vmatpush2.msra.mxu1 %v2442_v43  ;;  %1038 = vmatpush1.msra.mxu0 %v2164_v29 }
 0x244   :  { %936 = vmatprep.subr.mxu1 %v2448_v61  ;;  %1039 = vmatprep.subr.mxu0 %v2170_v30 }
 0x245   :  { %937 = vmatpush2.msra.mxu1 %v2454_v4  ;;  %1040 = vmatpush1.msra.mxu0 %v2176_v31 }
 0x246   :  { %939 = vmatmul.mubr.f32.vlgmr.msra.gmra.mxu1 %v2909_v22  ;;  %1041 = vmatprep.subr.mxu0 %v2182_v32 }
 0x247   :  { %1094 = vmatprep.subr.mxu1 %v2910_v23  ;;  %1042 = vmatpush1.msra.mxu0 %v2188_v33 }
 0x248   :  { %1095 = vmatpush1.msra.mxu1 %v1827_v44  ;;  %1043 = vmatprep.subr.mxu0 %v2194_v38  ;;  %v2912_v44 = vld [vmem:[#allocation6_spill] sm:$0xff] }
 0x249   :  { %1096 = vmatprep.subr.mxu1 %v1833_v45  ;;  %1044 = vmatpush1.msra.mxu0 %v2200_v39  ;;  %v2913_v45 = vld [vmem:[#allocation32_spill] sm:$0xff] }
 0x24a   :  { %1097 = vmatpush1.msra.mxu1 %v1840_v46  ;;  %1045 = vmatprep.subr.mxu0 %v2206_v40  ;;  %v2914_v46 = vld [vmem:[#allocation7_spill] sm:$0xff] }
 0x24b   :  { %1098 = vmatprep.subr.mxu1 %v1846_v47  ;;  %1046 = vmatpush1.msra.mxu0 %v2212_v41  ;;  %v2915_v47 = vld [vmem:[#allocation33_spill] sm:$0xff] }
 0x24c   :  { %1099 = vmatpush1.msra.mxu1 %v1853_v48  ;;  %1047 = vmatprep.subr.mxu0 %v2218_v42  ;;  %v2916_v48 = vld [vmem:[#allocation8_spill] sm:$0xff]  ;;  %v2676_v41 = vld [vmem:[%s2720_s4 + $0x1] ss:$4 sm:$0x3f] }
 0x24d   :  { %1100 = vmatprep.subr.mxu1 %v1859_v49  ;;  %1048 = vmatpush1.msra.mxu0 %v2873_v8  ;;  %v2917_v49 = vld [vmem:[#allocation34_spill] sm:$0xff] }
 0x24e   :  { %1101 = vmatpush1.msra.mxu1 %v1865_v50  ;;  %1049 = vmatprep.subr.mxu0 %v2874_v35  ;;  %v2918_v50 = vld [vmem:[#allocation9_spill] sm:$0xff] }
 0x24f   :  { %1102 = vmatprep.subr.mxu1 %v1871_v51  ;;  %1050 = vmatpush1.msra.mxu0 %v2875_v13  ;;  %v2919_v51 = vld [vmem:[#allocation35_spill] sm:$0xff] }
 0x250   :  { %1103 = vmatpush1.msra.mxu1 %v1877_v52  ;;  %1051 = vmatprep.subr.mxu0 %v2876_v15  ;;  %v2920_v52 = vld [vmem:[#allocation10_spill] sm:$0xff] }
 0x251   :  { %1104 = vmatprep.subr.mxu1 %v1883_v53  ;;  %1052 = vmatpush1.msra.mxu0 %v2877_v7  ;;  %v2921_v53 = vld [vmem:[#allocation11_spill] sm:$0xff] }
 0x252   :  { %1105 = vmatpush1.msra.mxu1 %v1889_v54  ;;  %1053 = vmatprep.subr.mxu0 %v2878_v34  ;;  %v2922_v54 = vld [vmem:[#allocation37_spill] sm:$0xff]  ;;  %v2927_v34 = vld [vmem:[#allocation15_spill] sm:$0xff] }
 0x253   :  { %1106 = vmatprep.subr.mxu1 %v1895_v55  ;;  %1054 = vmatpush1.msra.mxu0 %v2879_v0  ;;  %v2923_v55 = vld [vmem:[#allocation12_spill] sm:$0xff] }
 0x254   :  { %1107 = vmatpush1.msra.mxu1 %v1901_v56  ;;  %1055 = vmatprep.subr.mxu0 %v2880_v37  ;;  %v2924_v56 = vld [vmem:[#allocation13_spill] sm:$0xff]  ;;  %v2931_v37 = vld [vmem:[#allocation44_spill] sm:$0xff] }
 0x255   :  { %1108 = vmatprep.subr.mxu1 %v1907_v57  ;;  %1056 = vmatpush2.msra.mxu0 %v2881_v12  ;;  %v2925_v57 = vld [vmem:[#allocation14_spill] sm:$0xff]  ;;  %v2929_v12 = vld [vmem:[#allocation17_spill] sm:$0xff] }
 0x256   :  { %1109 = vmatpush1.msra.mxu1 %v1913_v58  ;;  %1057 = vmatprep.subr.mxu0 %v2911_v3  ;;  %v2926_v58 = vld [vmem:[#allocation40_spill] sm:$0xff] }
 0x257   :  { %1110 = vmatprep.subr.mxu1 %v2912_v44  ;;  %1058 = vmatpush2.msra.mxu0 %v2913_v45 }
 0x258   :  { %1111 = vmatpush1.msra.mxu1 %v2914_v46  ;;  %1059 = vmatprep.subr.mxu0 %v2915_v47 }
 0x259   :  { %1112 = vmatprep.subr.mxu1 %v2916_v48  ;;  %1060 = vmatpush2.msra.mxu0 %v2917_v49 }
 0x25a   :  { %1113 = vmatpush1.msra.mxu1 %v2918_v50  ;;  %1061 = vmatprep.subr.mxu0 %v2919_v51 }
 0x25b   :  { %1114 = vmatprep.subr.mxu1 %v2920_v52  ;;  %1062 = vmatpush2.msra.mxu0 %v2887_v6  ;;  %v2928_v6 = vld [vmem:[#allocation16_spill] sm:$0xff] }
 0x25c   :  { %1115 = vmatpush1.msra.mxu1 %v2921_v53  ;;  %1063 = vmatprep.subr.mxu0 %v2922_v54 }
 0x25d   :  { %1116 = vmatprep.subr.mxu1 %v2923_v55  ;;  %1064 = vmatpush2.msra.mxu0 %v2889_v1  ;;  %v2930_v1 = vld [vmem:[#allocation18_spill] sm:$0xff] }
 0x25e   :  { %1117 = vmatpush1.msra.mxu1 %v2924_v56  ;;  %1065 = vmatprep.subr.mxu0 %v2890_v63  ;;  %v2932_v63 = vld [vmem:[#allocation19_spill] sm:$0xff] }
 0x25f   :  { %1118 = vmatprep.subr.mxu1 %v2925_v57  ;;  %1066 = vmatpush2.msra.mxu0 %v2926_v58 }
 0x260   :  { %1119 = vmatpush1.msra.mxu1 %v2927_v34  ;;  %1067 = vmatprep.subr.mxu0 %v2892_v59  ;;  %v2935_v59 = vld [vmem:[#allocation21_spill] sm:$0xff] }
 0x261   :  { %1120 = vmatprep.subr.mxu1 %v2928_v6  ;;  %1068 = vmatpush2.msra.mxu0 %v2893_v5  ;;  %v2682_v5 = vld [vmem:[%s2720_s4 + $0x2] ss:$4 sm:$0x3f] }
 0x262   :  { %1121 = vmatpush1.msra.mxu1 %v2929_v12  ;;  %1069 = vmatprep.subr.mxu0 %v2894_v10 }
 0x263   :  { %1122 = vmatprep.subr.mxu1 %v2930_v1  ;;  %1070 = vmatpush2.msra.mxu0 %v2931_v37 }
 0x264   :  { %1123 = vmatpush1.msra.mxu1 %v2932_v63  ;;  %1071 = vmatprep.subr.mxu0 %v2896_v2  ;;  %v1177_v2 = vlaneseq }
 0x265   :  { %1124 = vmatprep.subr.mxu1 %v2934_v26  ;;  %1072 = vmatpush2.msra.mxu0 %v2897_v62  ;;  %v2937_v62 = vld [vmem:[#allocation58_spill] sm:$0xff] }
 0x266   :  { %1125 = vmatpush1.msra.mxu1 %v2935_v59  ;;  %1158 = vmatprep.mubr.f32.mxu1 %v2936_v27  ;;  %v1178_v28 = vshrl.u32 %v1177_v2, 7 }
 0x267   :  { %1073 = vmatprep.subr.mxu0 %v2898_v60  ;;  %1159 = vmatmul.mubr.f32.vlgmr.msra.gmra.mxu1 %v624_v25 }
 0x268   :  { %1074 = vmatpush2.msra.mxu0 %v2899_v11  ;;  %v1179_v32 = vsub.s32 0, %v1178_v28  ;;  %v1183_v38 = vsub.s32 1, %v1178_v28  ;;  %v1195_v51 = vsub.s32 4, %v1178_v28  ;;  %v1199_v58 = vsub.s32 5, %v1178_v28 }
 0x269   :  { %1075 = vmatprep.subr.mxu0 %v2900_v9 }
 0x26a   :  { %1076 = vmatpush2.msra.mxu0 %v2901_v14  ;;  %v1236_v13 = vrot.slane %v2676_v41, %v1183_v38  ;;  %v1232_v7 = vrot.slane %v2676_v41, %v1179_v32  ;;  %v1288_v60 = vrot.slane %v2682_v5, %v1183_v38  ;;  %v1191_v14 = vsub.s32 3, %v1178_v28 }
 0x26b   :  { %1077 = vmatprep.subr.mxu0 %v2902_v36  ;;  %v1248_v24 = vrot.slane %v2676_v41, %v1195_v51  ;;  %v1300_v26 = vrot.slane %v2682_v5, %v1195_v51 }
 0x26c   :  { %1078 = vmatpush2.msra.mxu0 %v2903_v16  ;;  %v1244_v45 = vrot.slane %v2676_v41, %v1191_v14  ;;  %v1296_v55 = vrot.slane %v2682_v5, %v1191_v14 }
 0x26d   :  { %1079 = vmatprep.subr.mxu0 %v2904_v17 }
 0x26e   :  { %1080 = vmatpush2.msra.mxu0 %v2905_v18 }
 0x26f   :  { %1081 = vmatprep.subr.mxu0 %v2906_v19  ;;  %v1284_v19 = vrot.slane %v2682_v5, %v1179_v32 }
 0x270   :  { %1082 = vmatpush2.msra.mxu0 %v2907_v20 }
 0x271   :  { %1083 = vmatprep.subr.mxu0 %v2908_v21 }
 0x272   :  { %1084 = vmatpush2.msra.mxu0 %v2442_v43  ;;  %v2671_v43 = vld [vmem:[%s2720_s4] ss:$4 sm:$0x3f] }
 0x273   :  { %1085 = vmatprep.subr.mxu0 %v2448_v61  ;;  %v1187_v61 = vsub.s32 2, %v1178_v28  ;;  %v1180_v0 = vrot.slane %v2671_v43, %v1179_v32  ;;  %v1184_v35 = vrot.slane %v2671_v43, %v1183_v38  ;;  %v1192_v44 = vrot.slane %v2671_v43, %v1191_v14 }
 0x274   :  { %1086 = vmatpush2.msra.mxu0 %v2454_v4  ;;  %v1196_v25 = vrot.slane %v2671_v43, %v1195_v51  ;;  %v1252_v28 = vrot.slane %v2676_v41, %v1199_v58  ;;  %v1304_v32 = vrot.slane %v2682_v5, %v1199_v58 }
 0x275   :  { %1088 = vmatmul.mubr.f32.vlgmr.msra.gmra.mxu0 %v2937_v62  ;;  %v1188_v16 = vrot.slane %v2671_v43, %v1187_v61  ;;  %v1240_v17 = vrot.slane %v2676_v41, %v1187_v61  ;;  %v1292_v22 = vrot.slane %v2682_v5, %v1187_v61 }
 0x27f   :  { %v862_v10 = vpop.f32.mrf.mxu0 }
 0x281   :  { %v864_v30 = vpop.f32.mrf.mxu0 }
 0x2c5   :  { %v791_v9 = vpop.f32.mrf.mxu1 }
 0x2c6   :  { %v863_v39 = vadd.f32 %v862_v10, %v791_v9 }
 0x2c7   :  { %v793_v29 = vpop.f32.mrf.mxu1 }
 0x2c8   :  { %v865_v33 = vadd.f32 %v864_v30, %v793_v29  ;;  %v867_v15 = vmax.f32 %v863_v39, 0.0  ;;  %v1200_v29 = vrot.slane %v2671_v43, %v1199_v58 }
 0x2ca   :  { %v868_v8 = vmax.f32 %v865_v33, 0.0  ;;  %v1207_v23 = vmul.f32 %v1180_v0, %v867_v15  ;;  %v1259_v46 = vmul.f32 %v1232_v7, %v867_v15  ;;  %v1311_v50 = vmul.f32 %v1284_v19, %v867_v15 }
 0x2cc   :  { %v1208_v20 = vmul.f32 %v1184_v35, %v868_v8  ;;  %v1260_v21 = vmul.f32 %v1236_v13, %v868_v8  ;;  %v1312_v3 = vmul.f32 %v1288_v60, %v868_v8 }
 0x2ce   :  { %v1213_v52 = vadd.f32 %v1208_v20, %v1207_v23  ;;  %v1265_v53 = vadd.f32 %v1260_v21, %v1259_v46  ;;  %v1317_v57 = vadd.f32 %v1312_v3, %v1311_v50 }
 0x2f4   :  { %v1011_v40 = vpop.f32.mrf.mxu0 }
 0x2f6   :  { %v1013_v11 = vpop.f32.mrf.mxu0 }
 0x306   :  { %v940_v31 = vpop.f32.mrf.mxu1 }
 0x307   :  { %v1012_v42 = vadd.f32 %v1011_v40, %v940_v31 }
 0x308   :  { %v942_v4 = vpop.f32.mrf.mxu1 }
 0x309   :  { %v1016_v36 = vmax.f32 %v1012_v42, 0.0  ;;  %v1014_v18 = vadd.f32 %v1013_v11, %v942_v4 }
 0x30b   :  { %v1209_v47 = vmul.f32 %v1188_v16, %v1016_v36  ;;  %v1261_v48 = vmul.f32 %v1240_v17, %v1016_v36  ;;  %v1017_v49 = vmax.f32 %v1014_v18, 0.0  ;;  %v1313_v54 = vmul.f32 %v1292_v22, %v1016_v36  ;;  %v1397_v22 = vld [vmem:[%s2721_s5] ss:$0 sm:$0xff] }
 0x30d   :  { %v1210_v34 = vmul.f32 %v1192_v44, %v1017_v49  ;;  %v1262_v6 = vmul.f32 %v1244_v45, %v1017_v49  ;;  %v1266_v1 = vadd.f32 %v1265_v53, %v1261_v48  ;;  %v1214_v37 = vadd.f32 %v1213_v52, %v1209_v47  ;;  %v1399_v44 = vld [vmem:[%s2721_s5 + $0x1] ss:$0 sm:$0xff]  ;;  %v1398_v45 = vld [vmem:[%s2722_s6] ss:$0 sm:$0xff]  ;;  %v1400_v47 = vld [vmem:[%s2721_s5 + $0x2] ss:$0 sm:$0xff] }
 0x30e   :  { %v1314_v59 = vmul.f32 %v1296_v55, %v1017_v49  ;;  %v1318_v2 = vadd.f32 %v1317_v57, %v1313_v54  ;;  %s1423_s6 = smov 3  }
 0x30f   :  { %v1267_v30 = vadd.f32 %v1266_v1, %v1262_v6  ;;  %v1215_v31 = vadd.f32 %v1214_v37, %v1210_v34 }
 0x310   :  { %v1319_v42 = vadd.f32 %v1318_v2, %v1314_v59 }
 0x327   :  { %v1160_v56 = vpop.f32.mrf.mxu1 }
 0x329   :  { %v1162_v27 = vpop.f32.mrf.mxu1 }
 0x335   :  { %v1089_v12 = vpop.f32.mrf.mxu0 }
 0x336   :  { %v1161_v63 = vadd.f32 %v1160_v56, %v1089_v12 }
 0x337   :  { %v1091_v62 = vpop.f32.mrf.mxu0 }
 0x338   :  { %v1165_v9 = vmax.f32 %v1161_v63, 0.0  ;;  %v1163_v10 = vadd.f32 %v1162_v27, %v1091_v62 }
 0x33a   :  { %v1166_v33 = vmax.f32 %v1163_v10, 0.0  ;;  %v1263_v38 = vmul.f32 %v1248_v24, %v1165_v9  ;;  %v1211_v39 = vmul.f32 %v1196_v25, %v1165_v9  ;;  %v1315_v40 = vmul.f32 %v1300_v26, %v1165_v9 }
 0x33c   :  { %v1264_v61 = vmul.f32 %v1252_v28, %v1166_v33  ;;  %v1268_v4 = vadd.f32 %v1267_v30, %v1263_v38  ;;  %v1212_v0 = vmul.f32 %v1200_v29, %v1166_v33  ;;  %v1216_v8 = vadd.f32 %v1215_v31, %v1211_v39 }
 0x33d   :  { %v1316_v15 = vmul.f32 %v1304_v32, %v1166_v33  ;;  %v1320_v7 = vadd.f32 %v1319_v42, %v1315_v40 }
 0x33e   :  { %v1269_v35 = vadd.f32 %v1268_v4, %v1264_v61  ;;  %v1217_v13 = vadd.f32 %v1216_v8, %v1212_v0 }
 0x33f   :  { %v1321_v43 = vadd.f32 %v1320_v7, %v1316_v15 }
 0x340   :  { %1270 = vadd.xlane.f32.xlu1 %v1269_v35  ;;  %1218 = vadd.xlane.f32.xlu0 %v1217_v13 }
 0x344   :  { %1322 = vadd.xlane.f32.xlu0 %v1321_v43 }
 0x3c9   :  { %v1271_v41 = vpop.xlane.xlu1 %1270  ;;  %v1219_v60 = vpop.xlane.xlu0 %1218 }
 0x3ca   :  { %v1394_v5 = vmul.f32 -1.442695, %v1271_v41  ;;  %v1392_v11 = vmul.f32 -1.442695, %v1219_v60 }
 0x3cc   :  { %1405 = vpow2.f32 %v1394_v5 }
 0x3cd   :  { %1407 = vpow2.f32 %v1392_v11  ;;  %v1323_v14 = vpop.xlane.xlu0 %1322 }
 0x3ce   :  { %v1396_v36 = vmul.f32 -1.442695, %v1323_v14 }
 0x3d0   :  { %1409 = vpow2.f32 %v1396_v36 }
 0x3d9   :  { %v1406_v16 = vpop.eup %1405 }
 0x3da   :  { %v1408_v17 = vpop.eup %1407  ;;  %v1275_v18 = vadd.f32 1.0, %v1406_v16 }
 0x3db   :  { %v1223_v19 = vadd.f32 1.0, %v1408_v17 }
 0x3dc   :  { %1411 = vrcp.f32 %v1275_v18 }
 0x3dd   :  { %v1410_v20 = vpop.eup %1409  ;;  %1413 = vrcp.f32 %v1223_v19 }
 0x3de   :  { %v1327_v21 = vadd.f32 1.0, %v1410_v20 }
 0x3e0   :  { %1415 = vrcp.f32 %v1327_v21 }
 0x3e9   :  { %v1412_v23 = vpop.eup %1411 }
 0x3ea   :  { %v1414_v3 = vpop.eup %1413  ;;  %v1349_v50 = vmul.f32 %v1412_v23, %v1399_v44 }
 0x3eb   :  { %v1336_v46 = vmul.f32 %v1414_v3, %v1397_v22  ;;  %v1365_v48 = vsel %vm1364_vm3, %v1414_v3, %v1412_v23 }
 0x3ed   :  { %v1416_v49 = vpop.eup %1415  ;;  %v1343_v51 = vadd.f32 %v1398_v45, %v1336_v46 }
 0x3ee   :  { %v1356_v52 = vmul.f32 %v1416_v49, %v1400_v47  ;;  %v1367_v53 = vsel %vm1366_vm4, %v1365_v48, %v1416_v49 }
 0x3ef   :  { %v1350_v54 = vadd.f32 %v1349_v50, %v1343_v51 }
 0x3f1   :  { %v1357_v55 = vadd.f32 %v1356_v52, %v1350_v54 }
 0x3f3   :  { %v1401_v56 = vmul.f32 -1.442695, %v1357_v55 }
 0x3f5   :  { %1417 = vpow2.f32 %v1401_v56 }
 0x402   :  { %v1418_v57 = vpop.eup %1417 }
 0x403   :  { %v1361_v58 = vadd.f32 1.0, %v1418_v57 }
 0x405   :  { %1419 = vrcp.f32 %v1361_v58 }
 0x412   :  { %v1420_v34 = vpop.eup %1419 }
 0x413   :  { %1369 = vrot.lane.b32.xlu0 %v1420_v34, %s1423_s6 }
 0x485   :  { %v1370_v6 = vpop.permute.xlu0 %1369 }
 0x486   :  { %v1373_v12 = vsel %vm1372_vm5, %v1367_v53, %v1370_v6 }
 0x487   :  { %v1375_v1 = vsel %vm1374_vm6, %v1373_v12, 0.0 }
 0x488   :  { %1376 = vst [vmem:[%s2723_s7] sm:$0xff] %v1375_v1 }

</bundles_post_ra>
